<compile_context>
chip_gen: v7x
topology: tpu7x:2x2x1
jax: 0.10.0
libtpu: 0.0.40
codegen_flags: <defaults>
</compile_context>

<pallas_src>
import functools

import jax
import jax.numpy as jnp
from jax.experimental import pallas as pl
from jax.experimental.pallas import tpu as pltpu

DIM = 32     # DYCls.dim (power of two: in-kernel rep/seg use shift/mask)
MID = 32     # DYCls mid
LANES = 128  # TPU lane width


def _hsigmoid(v):
    # relu6(v + 3) / 3
    return jnp.clip(v + 3.0, 0.0, 6.0) * (1.0 / 3.0)


# ----------------------------- Pallas kernel --------------------------------

def _dycls_kernel(x_ref, wfc1_ref, wse_ref, wphi_ref, wscale_ref,
                  wcls_ref, bcls_ref, wq_ref, wp_ref, bn_ref, o_ref):
    f32 = jnp.float32
    bf16 = jnp.bfloat16

    x = x_ref[...].astype(bf16)                                         # (TB, inp)

    # ---- SE-gated hidden features: y = y1 * hsigmoid(W_se @ y1) -----------
    y1 = jnp.dot(x, wfc1_ref[...], preferred_element_type=f32)          # (TB, MID)
    gate = _hsigmoid(jnp.dot(y1.astype(bf16), wse_ref[...],
                             preferred_element_type=f32))
    y = (y1 * gate).astype(bf16)                                        # (TB, MID)

    # ---- dynamic per-sample matrix (flattened) + dynamic channel scale ----
    phi = jnp.dot(y, wphi_ref[...], preferred_element_type=f32)         # (TB, DIM*DIM)
    dy_scale = _hsigmoid(jnp.dot(y, wscale_ref[...],
                                 preferred_element_type=f32))           # (TB, oup)

    # ---- static classifier path, gated -------------------------------------
    cls = jnp.dot(x, wcls_ref[...], preferred_element_type=f32) + bcls_ref[...]
    r = dy_scale * cls                                                  # (TB, oup)

    # ---- query path: cls_q -> bn1 (folded to scale/shift) ------------------
    q = jnp.dot(x, wq_ref[...], preferred_element_type=f32)             # (TB, DIM)
    q1 = q * bn_ref[0:1, :] + bn_ref[1:2, :]                            # (TB, DIM)

    # ---- per-sample mat-vec: m[b,i] = sum_j phi[b, i*DIM+j] * q1[b, j] ------
    # Expressed as two lane-dense MXU matmuls against constant 0/1 matrices.
    # rep[j, k] = 1 iff (k & (DIM-1)) == j   -> t[b, k] = q1[b, k % DIM]
    # seg[k, i] = 1 iff (k >> log2(DIM)) == i -> segment-sum of length DIM
    # Both constants are generated in-kernel (iota + shift/mask compare) so
    # they are never shipped from HBM and need no BlockSpec / DMA / buffers.
    shift, mask = DIM.bit_length() - 1, DIM - 1
    j_idx = jax.lax.broadcasted_iota(jnp.int32, (DIM, DIM * DIM), 0)
    k_idx = jax.lax.broadcasted_iota(jnp.int32, (DIM, DIM * DIM), 1)
    rep = jnp.where((k_idx & mask) == j_idx, 1.0, 0.0).astype(bf16)     # (DIM, DIM*DIM)
    kk = jax.lax.broadcasted_iota(jnp.int32, (DIM * DIM, DIM), 0)
    ii = jax.lax.broadcasted_iota(jnp.int32, (DIM * DIM, DIM), 1)
    seg = jnp.where((kk >> shift) == ii, 1.0, 0.0).astype(bf16)         # (DIM*DIM, DIM)

    t = jnp.dot(q1.astype(bf16), rep, preferred_element_type=f32)       # (TB, DIM*DIM)
    # TODO(synk): if profiling at tile_b~128+ shows the MXU/vex slot binding,
    # replace these two constant matmuls with a VPU lane-replicate + roll-based
    # segment sum (moves ~40% of the vmatmul pushes onto the idle XLU).
    m = jnp.dot((phi * t).astype(bf16), seg,
                preferred_element_type=f32)                             # (TB, DIM)

    # ---- bn2 + residual, then cls_p and the gated static path --------------
    q2 = (m * bn_ref[2:3, :] + bn_ref[3:4, :]) + q1                     # (TB, DIM)
    out = jnp.dot(q2.astype(bf16), wp_ref[...], preferred_element_type=f32) + r
    o_ref[...] = out.astype(o_ref.dtype)


# ------------------------------ one-time prep --------------------------------

def dycls_prepare(params, eps=1e-5):
    """One-time parameter prep (hoisted out of the per-call forward):
    transpose weights to (in, out), cast to bf16, fold eval-mode BatchNorm into
    per-feature scale/shift, and pad the class dim up to a multiple of 128 so
    MXU N-tiles are full and output stores are unmasked (lane-dense)."""
    bf16 = jnp.bfloat16
    f32 = jnp.float32
    oup = params["w_cls"].shape[0]
    oup_pad = max(LANES, pl.cdiv(oup, LANES) * LANES)

    def pad_out(w_t):  # zero-pad the trailing (class) dim of an (in, oup) weight
        return jnp.pad(w_t, ((0, 0), (0, oup_pad - oup)))

    prep = {
        "w_fc1": params["w_fc1"].T.astype(bf16),                 # (inp, MID)
        "w_se": params["w_se"].T.astype(bf16),                   # (MID, MID)
        "w_phi": params["w_phi"].T.astype(bf16),                 # (MID, DIM*DIM)
        "w_scale": pad_out(params["w_scale"].T).astype(bf16),    # (MID, oup_pad)
        "w_cls": pad_out(params["w_cls"].T).astype(bf16),        # (inp, oup_pad)
        "b_cls": jnp.pad(params["b_cls"], (0, oup_pad - oup))
                    .reshape(1, oup_pad).astype(f32),            # (1, oup_pad)
        "w_q": params["w_q"].T.astype(bf16),                     # (inp, DIM)
        "w_p": pad_out(params["w_p"].T).astype(bf16),            # (DIM, oup_pad)
    }

    # Eval-mode BatchNorm1d folded to per-feature scale/shift (kept in f32).
    # TODO(synk): training-mode BatchNorm1d (batch statistics) not implemented.
    s1 = params["bn1_gamma"] / jnp.sqrt(params["bn1_var"] + eps)
    sh1 = params["bn1_beta"] - params["bn1_mean"] * s1
    s2 = params["bn2_gamma"] / jnp.sqrt(params["bn2_var"] + eps)
    sh2 = params["bn2_beta"] - params["bn2_mean"] * s2
    prep["bn"] = jnp.stack([s1, sh1, s2, sh2]).astype(f32)       # (4, DIM)
    return prep


def _pick_tile_b(b):
    """Batch tile: multiple of 16 (bf16 sublane packing / MXU M-fill).
    Small batches -> one grid step; large batches -> >=2 'parallel' steps
    (v7x megacore), each capped at 128 rows to bound the (TB,1024) temps."""
    b16 = pl.cdiv(b, 16) * 16
    if b16 <= 128:
        return b16
    return min(128, pl.cdiv(pl.cdiv(b16, 2), 16) * 16)


def _vmem_limit_bytes(tile_b, inp, oup_pad):
    """Explicit scoped-VMEM budget (don't rely on per-chip defaults; v7x has
    only 64 MiB physical / 32 MiB default scoped)."""
    w = 2 * (inp * MID + MID * MID + MID * DIM * DIM + MID * oup_pad
             + inp * oup_pad + inp * DIM + DIM * oup_pad)            # bf16 weights
    w += 4 * (oup_pad + 4 * DIM)                                     # f32 bias + bn
    io = 4 * tile_b * (inp + oup_pad)                                # x / out tiles
    inter = 4 * tile_b * (3 * DIM * DIM + 3 * oup_pad + 6 * DIM)     # live temps
    est = 2 * (w + io) + inter + (1 << 20)                           # dbl-buffer + slack
    return int(min(max(2 * est, 8 << 20), 32 << 20))


# ------------------------------- forward -------------------------------------

def dycls_forward(x, prep, *, oup):
    """Fused Pallas implementation of DYCls.forward (eval-mode BatchNorm).
    `prep` comes from dycls_prepare(); `oup` is the unpadded class count."""
    b, inp = x.shape
    oup_pad = prep["w_cls"].shape[1]

    tile_b = _pick_tile_b(b)
    b_pad = pl.cdiv(b, tile_b) * tile_b
    if b_pad != b:
        x = jnp.pad(x, ((0, b_pad - b), (0, 0)))

    full = lambda i: (0, 0)
    weights = (prep["w_fc1"], prep["w_se"], prep["w_phi"], prep["w_scale"],
               prep["w_cls"], prep["b_cls"], prep["w_q"], prep["w_p"], prep["bn"])

    out = pl.pallas_call(
        _dycls_kernel,
        out_shape=jax.ShapeDtypeStruct((b_pad, oup_pad), jnp.float32),
        grid_spec=pltpu.PrefetchScalarGridSpec(
            num_scalar_prefetch=0,
            grid=(b_pad // tile_b,),
            in_specs=[pl.BlockSpec((tile_b, inp), lambda i: (i, 0))]
                     + [pl.BlockSpec(w.shape, full) for w in weights],
            out_specs=pl.BlockSpec((tile_b, oup_pad), lambda i: (i, 0)),
        ),
        compiler_params=pltpu.CompilerParams(
            dimension_semantics=("parallel",),
            vmem_limit_bytes=_vmem_limit_bytes(tile_b, inp, oup_pad),
        ),
    )(x, *weights)
    return out[:b, :oup]


# ----------------------------- pure-JAX reference -----------------------------

def dycls_reference(x, params):
    eps = 1e-5
    hsig = lambda v: jnp.clip(v + 3.0, 0.0, 6.0) / 3.0
    b = x.shape[0]
    y1 = x @ params["w_fc1"].T
    y = y1 * hsig(y1 @ params["w_se"].T)
    dy_phi = (y @ params["w_phi"].T).reshape(b, DIM, DIM)
    dy_scale = hsig(y @ params["w_scale"].T)
    r = dy_scale * (x @ params["w_cls"].T + params["b_cls"][None, :])
    q = x @ params["w_q"].T
    q1 = ((q - params["bn1_mean"]) / jnp.sqrt(params["bn1_var"] + eps)
          * params["bn1_gamma"] + params["bn1_beta"])
    m = jnp.einsum("bij,bj->bi", dy_phi, q1)
    m = ((m - params["bn2_mean"]) / jnp.sqrt(params["bn2_var"] + eps)
         * params["bn2_gamma"] + params["bn2_beta"])
    q2 = m + q1
    return q2 @ params["w_p"].T + r


# ---------------------------------- main --------------------------------------

if __name__ == "__main__":
    b, inp, oup = 16, 64, 128   # oup=128 -> lane-dense output stores

    key = jax.random.PRNGKey(0)
    keys = jax.random.split(key, 17)

    def lin(k, out_f, in_f):
        bound = 1.0 / (in_f ** 0.5)
        return jax.random.uniform(k, (out_f, in_f), jnp.float32, -bound, bound)

    params = {
        "w_cls": lin(keys[0], oup, inp),
        "b_cls": jax.random.uniform(keys[1], (oup,), jnp.float32,
                                    -1.0 / inp ** 0.5, 1.0 / inp ** 0.5),
        "w_q": lin(keys[2], DIM, inp),
        "w_p": lin(keys[3], oup, DIM),
        "w_fc1": lin(keys[4], MID, inp),
        "w_se": lin(keys[5], MID, MID),
        "w_phi": lin(keys[6], DIM * DIM, MID),
        "w_scale": lin(keys[7], oup, MID),
        "bn1_gamma": jax.random.uniform(keys[8], (DIM,), jnp.float32, 0.5, 1.5),
        "bn1_beta": 0.1 * jax.random.normal(keys[9], (DIM,), jnp.float32),
        "bn1_mean": 0.1 * jax.random.normal(keys[10], (DIM,), jnp.float32),
        "bn1_var": jax.random.uniform(keys[11], (DIM,), jnp.float32, 0.5, 1.5),
        "bn2_gamma": jax.random.uniform(keys[12], (DIM,), jnp.float32, 0.5, 1.5),
        "bn2_beta": 0.1 * jax.random.normal(keys[13], (DIM,), jnp.float32),
        "bn2_mean": 0.1 * jax.random.normal(keys[14], (DIM,), jnp.float32),
        "bn2_var": jax.random.uniform(keys[15], (DIM,), jnp.float32, 0.5, 1.5),
    }
    x = jax.random.normal(keys[16], (b, inp), jnp.float32)

    # One-time weight prep (hoisted out of the jitted per-call forward).
    prep = jax.block_until_ready(dycls_prepare(params))

    fwd = jax.jit(functools.partial(dycls_forward, oup=oup))
    out = jax.block_until_ready(fwd(x, prep))

    ref = jax.block_until_ready(dycls_reference(x, params))

    assert out.shape == ref.shape == (b, oup)
    # Loose tolerance: kernel uses bf16 MXU operands with f32 accumulation.
    max_err = float(jnp.max(jnp.abs(out - ref)))
    assert jnp.allclose(out, ref, atol=5e-2, rtol=5e-2), max_err
    print("KERNEL_OK")
</pallas_src>

<mosaic_0001>
module attributes {stable_mosaic.version = 11 : i64} {
  func.func @_dycls_kernel(%arg0: i32, %arg1: memref<16x64xf32, #tpu.memory_space<vmem>>, %arg2: memref<64x32xbf16, #tpu.memory_space<vmem>>, %arg3: memref<32x32xbf16, #tpu.memory_space<vmem>>, %arg4: memref<32x1024xbf16, #tpu.memory_space<vmem>>, %arg5: memref<32x128xbf16, #tpu.memory_space<vmem>>, %arg6: memref<64x128xbf16, #tpu.memory_space<vmem>>, %arg7: memref<1x128xf32, #tpu.memory_space<vmem>>, %arg8: memref<64x32xbf16, #tpu.memory_space<vmem>>, %arg9: memref<32x128xbf16, #tpu.memory_space<vmem>>, %arg10: memref<4x32xf32, #tpu.memory_space<vmem>>, %arg11: memref<16x128xf32, #tpu.memory_space<vmem>>) attributes {dimension_semantics = [#tpu.dimension_semantics<parallel>], iteration_bounds = array<i64: 1>, scalar_prefetch = 0 : i64, scratch_operands = 0 : i64, tpu.core_type = #tpu.core_type<tc>, window_params = [{transform_indices = @transform_0, window_bounds = array<i64: 16, 64>}, {pipeline_mode = #tpu.pipeline_mode<synchronous>, transform_indices = @transform_1, window_bounds = array<i64: 64, 32>}, {pipeline_mode = #tpu.pipeline_mode<synchronous>, transform_indices = @transform_2, window_bounds = array<i64: 32, 32>}, {pipeline_mode = #tpu.pipeline_mode<synchronous>, transform_indices = @transform_3, window_bounds = array<i64: 32, 1024>}, {pipeline_mode = #tpu.pipeline_mode<synchronous>, transform_indices = @transform_4, window_bounds = array<i64: 32, 128>}, {pipeline_mode = #tpu.pipeline_mode<synchronous>, transform_indices = @transform_5, window_bounds = array<i64: 64, 128>}, {pipeline_mode = #tpu.pipeline_mode<synchronous>, transform_indices = @transform_6, window_bounds = array<i64: 1, 128>}, {pipeline_mode = #tpu.pipeline_mode<synchronous>, transform_indices = @transform_7, window_bounds = array<i64: 64, 32>}, {pipeline_mode = #tpu.pipeline_mode<synchronous>, transform_indices = @transform_8, window_bounds = array<i64: 32, 128>}, {pipeline_mode = #tpu.pipeline_mode<synchronous>, transform_indices = @transform_9, window_bounds = array<i64: 4, 32>}, {transform_indices = @transform_10, window_bounds = array<i64: 16, 128>}]} {
    %c0 = arith.constant 0 : index
    %c0_0 = arith.constant 0 : index
    %0 = vector.load %arg1[%c0, %c0_0] : memref<16x64xf32, #tpu.memory_space<vmem>>, vector<16x64xf32>
    %1 = arith.truncf %0 : vector<16x64xf32> to vector<16x64xbf16>
    %c0_1 = arith.constant 0 : index
    %c0_2 = arith.constant 0 : index
    %2 = vector.load %arg2[%c0_1, %c0_2] : memref<64x32xbf16, #tpu.memory_space<vmem>>, vector<64x32xbf16>
    %cst = arith.constant dense<0.000000e+00> : vector<16x32xf32>
    %3 = tpu.matmul %1, %2, %cst {dimension_numbers = #tpu.dot_dimension_numbers<[1], [0], [0], [1], [0, 0, 1, 1], [], []>} : vector<16x64xbf16>, vector<64x32xbf16>, vector<16x32xf32> -> vector<16x32xf32>
    %4 = arith.truncf %3 : vector<16x32xf32> to vector<16x32xbf16>
    %c0_3 = arith.constant 0 : index
    %c0_4 = arith.constant 0 : index
    %5 = vector.load %arg3[%c0_3, %c0_4] : memref<32x32xbf16, #tpu.memory_space<vmem>>, vector<32x32xbf16>
    %cst_5 = arith.constant dense<0.000000e+00> : vector<16x32xf32>
    %6 = tpu.matmul %4, %5, %cst_5 {dimension_numbers = #tpu.dot_dimension_numbers<[1], [0], [0], [1], [0, 0, 1, 1], [], []>} : vector<16x32xbf16>, vector<32x32xbf16>, vector<16x32xf32> -> vector<16x32xf32>
    %cst_6 = arith.constant 3.000000e+00 : f32
    %7 = vector.broadcast %cst_6 : f32 to vector<16x32xf32>
    %8 = arith.addf %6, %7 : vector<16x32xf32>
    %cst_7 = arith.constant 0.000000e+00 : f32
    %cst_8 = arith.constant 6.000000e+00 : f32
    %9 = vector.broadcast %cst_7 : f32 to vector<16x32xf32>
    %10 = arith.maximumf %9, %8 : vector<16x32xf32>
    %11 = vector.broadcast %cst_8 : f32 to vector<16x32xf32>
    %12 = arith.minimumf %11, %10 : vector<16x32xf32>
    %cst_9 = arith.constant 0.333333343 : f32
    %13 = vector.broadcast %cst_9 : f32 to vector<16x32xf32>
    %14 = arith.mulf %12, %13 : vector<16x32xf32>
    %15 = arith.mulf %3, %14 : vector<16x32xf32>
    %16 = arith.truncf %15 : vector<16x32xf32> to vector<16x32xbf16>
    %c0_10 = arith.constant 0 : index
    %c0_11 = arith.constant 0 : index
    %17 = vector.load %arg4[%c0_10, %c0_11] : memref<32x1024xbf16, #tpu.memory_space<vmem>>, vector<32x1024xbf16>
    %cst_12 = arith.constant dense<0.000000e+00> : vector<16x1024xf32>
    %18 = tpu.matmul %16, %17, %cst_12 {dimension_numbers = #tpu.dot_dimension_numbers<[1], [0], [0], [1], [0, 0, 1, 1], [], []>} : vector<16x32xbf16>, vector<32x1024xbf16>, vector<16x1024xf32> -> vector<16x1024xf32>
    %c0_13 = arith.constant 0 : index
    %c0_14 = arith.constant 0 : index
    %19 = vector.load %arg5[%c0_13, %c0_14] : memref<32x128xbf16, #tpu.memory_space<vmem>>, vector<32x128xbf16>
    %cst_15 = arith.constant dense<0.000000e+00> : vector<16x128xf32>
    %20 = tpu.matmul %16, %19, %cst_15 {dimension_numbers = #tpu.dot_dimension_numbers<[1], [0], [0], [1], [0, 0, 1, 1], [], []>} : vector<16x32xbf16>, vector<32x128xbf16>, vector<16x128xf32> -> vector<16x128xf32>
    %cst_16 = arith.constant 3.000000e+00 : f32
    %21 = vector.broadcast %cst_16 : f32 to vector<16x128xf32>
    %22 = arith.addf %20, %21 : vector<16x128xf32>
    %cst_17 = arith.constant 0.000000e+00 : f32
    %cst_18 = arith.constant 6.000000e+00 : f32
    %23 = vector.broadcast %cst_17 : f32 to vector<16x128xf32>
    %24 = arith.maximumf %23, %22 : vector<16x128xf32>
    %25 = vector.broadcast %cst_18 : f32 to vector<16x128xf32>
    %26 = arith.minimumf %25, %24 : vector<16x128xf32>
    %cst_19 = arith.constant 0.333333343 : f32
    %27 = vector.broadcast %cst_19 : f32 to vector<16x128xf32>
    %28 = arith.mulf %26, %27 : vector<16x128xf32>
    %c0_20 = arith.constant 0 : index
    %c0_21 = arith.constant 0 : index
    %29 = vector.load %arg6[%c0_20, %c0_21] : memref<64x128xbf16, #tpu.memory_space<vmem>>, vector<64x128xbf16>
    %cst_22 = arith.constant dense<0.000000e+00> : vector<16x128xf32>
    %30 = tpu.matmul %1, %29, %cst_22 {dimension_numbers = #tpu.dot_dimension_numbers<[1], [0], [0], [1], [0, 0, 1, 1], [], []>} : vector<16x64xbf16>, vector<64x128xbf16>, vector<16x128xf32> -> vector<16x128xf32>
    %c0_23 = arith.constant 0 : index
    %c0_24 = arith.constant 0 : index
    %31 = vector.load %arg7[%c0_23, %c0_24] : memref<1x128xf32, #tpu.memory_space<vmem>>, vector<1x128xf32>
    %32 = vector.broadcast %31 : vector<1x128xf32> to vector<16x128xf32>
    %33 = arith.addf %30, %32 : vector<16x128xf32>
    %34 = arith.mulf %28, %33 : vector<16x128xf32>
    %c0_25 = arith.constant 0 : index
    %c0_26 = arith.constant 0 : index
    %35 = vector.load %arg8[%c0_25, %c0_26] : memref<64x32xbf16, #tpu.memory_space<vmem>>, vector<64x32xbf16>
    %cst_27 = arith.constant dense<0.000000e+00> : vector<16x32xf32>
    %36 = tpu.matmul %1, %35, %cst_27 {dimension_numbers = #tpu.dot_dimension_numbers<[1], [0], [0], [1], [0, 0, 1, 1], [], []>} : vector<16x64xbf16>, vector<64x32xbf16>, vector<16x32xf32> -> vector<16x32xf32>
    %c0_28 = arith.constant 0 : index
    %c0_29 = arith.constant 0 : index
    %37 = vector.load %arg10[%c0_28, %c0_29] : memref<4x32xf32, #tpu.memory_space<vmem>>, vector<1x32xf32>
    %38 = vector.broadcast %37 : vector<1x32xf32> to vector<16x32xf32>
    %39 = arith.mulf %36, %38 : vector<16x32xf32>
    %c1 = arith.constant 1 : index
    %c0_30 = arith.constant 0 : index
    %40 = vector.load %arg10[%c1, %c0_30] : memref<4x32xf32, #tpu.memory_space<vmem>>, vector<1x32xf32>
    %41 = vector.broadcast %40 : vector<1x32xf32> to vector<16x32xf32>
    %42 = arith.addf %39, %41 : vector<16x32xf32>
    %43 = tpu.iota {dimensions = array<i32: 0>} : vector<32x1024xi32>
    %44 = tpu.iota {dimensions = array<i32: 1>} : vector<32x1024xi32>
    %c31_i32 = arith.constant 31 : i32
    %45 = vector.broadcast %c31_i32 : i32 to vector<32x1024xi32>
    %46 = arith.andi %44, %45 : vector<32x1024xi32>
    %47 = arith.cmpi eq, %46, %43 : vector<32x1024xi32>
    %cst_31 = arith.constant 1.000000e+00 : f32
    %cst_32 = arith.constant 0.000000e+00 : f32
    %48 = vector.broadcast %cst_31 : f32 to vector<32x1024xf32>
    %49 = vector.broadcast %cst_32 : f32 to vector<32x1024xf32>
    %50 = arith.select %47, %48, %49 : vector<32x1024xi1>, vector<32x1024xf32>
    %51 = arith.truncf %50 : vector<32x1024xf32> to vector<32x1024xbf16>
    %52 = tpu.iota {dimensions = array<i32: 0>} : vector<1024x32xi32>
    %53 = tpu.iota {dimensions = array<i32: 1>} : vector<1024x32xi32>
    %c5_i32 = arith.constant 5 : i32
    %54 = vector.broadcast %c5_i32 : i32 to vector<1024x32xi32>
    %55 = arith.shrsi %52, %54 : vector<1024x32xi32>
    %56 = arith.cmpi eq, %55, %53 : vector<1024x32xi32>
    %cst_33 = arith.constant 1.000000e+00 : f32
    %cst_34 = arith.constant 0.000000e+00 : f32
    %57 = vector.broadcast %cst_33 : f32 to vector<1024x32xf32>
    %58 = vector.broadcast %cst_34 : f32 to vector<1024x32xf32>
    %59 = arith.select %56, %57, %58 : vector<1024x32xi1>, vector<1024x32xf32>
    %60 = arith.truncf %59 : vector<1024x32xf32> to vector<1024x32xbf16>
    %61 = arith.truncf %42 : vector<16x32xf32> to vector<16x32xbf16>
    %cst_35 = arith.constant dense<0.000000e+00> : vector<16x1024xf32>
    %62 = tpu.matmul %61, %51, %cst_35 {dimension_numbers = #tpu.dot_dimension_numbers<[1], [0], [0], [1], [0, 0, 1, 1], [], []>} : vector<16x32xbf16>, vector<32x1024xbf16>, vector<16x1024xf32> -> vector<16x1024xf32>
    %63 = arith.mulf %18, %62 : vector<16x1024xf32>
    %64 = arith.truncf %63 : vector<16x1024xf32> to vector<16x1024xbf16>
    %cst_36 = arith.constant dense<0.000000e+00> : vector<16x32xf32>
    %65 = tpu.matmul %64, %60, %cst_36 {dimension_numbers = #tpu.dot_dimension_numbers<[1], [0], [0], [1], [0, 0, 1, 1], [], []>} : vector<16x1024xbf16>, vector<1024x32xbf16>, vector<16x32xf32> -> vector<16x32xf32>
    %c2 = arith.constant 2 : index
    %c0_37 = arith.constant 0 : index
    %66 = vector.load %arg10[%c2, %c0_37] : memref<4x32xf32, #tpu.memory_space<vmem>>, vector<1x32xf32>
    %67 = vector.broadcast %66 : vector<1x32xf32> to vector<16x32xf32>
    %68 = arith.mulf %65, %67 : vector<16x32xf32>
    %c3 = arith.constant 3 : index
    %c0_38 = arith.constant 0 : index
    %69 = vector.load %arg10[%c3, %c0_38] : memref<4x32xf32, #tpu.memory_space<vmem>>, vector<1x32xf32>
    %70 = vector.broadcast %69 : vector<1x32xf32> to vector<16x32xf32>
    %71 = arith.addf %68, %70 : vector<16x32xf32>
    %72 = arith.addf %71, %42 : vector<16x32xf32>
    %73 = arith.truncf %72 : vector<16x32xf32> to vector<16x32xbf16>
    %c0_39 = arith.constant 0 : index
    %c0_40 = arith.constant 0 : index
    %74 = vector.load %arg9[%c0_39, %c0_40] : memref<32x128xbf16, #tpu.memory_space<vmem>>, vector<32x128xbf16>
    %cst_41 = arith.constant dense<0.000000e+00> : vector<16x128xf32>
    %75 = tpu.matmul %73, %74, %cst_41 {dimension_numbers = #tpu.dot_dimension_numbers<[1], [0], [0], [1], [0, 0, 1, 1], [], []>} : vector<16x32xbf16>, vector<32x128xbf16>, vector<16x128xf32> -> vector<16x128xf32>
    %76 = arith.addf %75, %34 : vector<16x128xf32>
    %c0_42 = arith.constant 0 : index
    %c0_43 = arith.constant 0 : index
    %77 = vector.load %arg11[%c0_42, %c0_43] : memref<16x128xf32, #tpu.memory_space<vmem>>, vector<16x128xf32>
    tpu.vector_store %arg11[%c0_42, %c0_43], %76 {strides = array<i32>} : memref<16x128xf32, #tpu.memory_space<vmem>>, vector<16x128xf32>,
    return
  }
  func.func @transform_0(%arg0: i32) -> (i32, i32) {
    %c0_i32 = arith.constant 0 : i32
    %c0_i32_0 = arith.constant 0 : i32
    return %arg0, %c0_i32 : i32, i32
  }
  func.func @transform_1(%arg0: i32) -> (i32, i32) {
    %c0_i32 = arith.constant 0 : i32
    %c0_i32_0 = arith.constant 0 : i32
    %c0_i32_1 = arith.constant 0 : i32
    return %c0_i32, %c0_i32_0 : i32, i32
  }
  func.func @transform_2(%arg0: i32) -> (i32, i32) {
    %c0_i32 = arith.constant 0 : i32
    %c0_i32_0 = arith.constant 0 : i32
    %c0_i32_1 = arith.constant 0 : i32
    return %c0_i32, %c0_i32_0 : i32, i32
  }
  func.func @transform_3(%arg0: i32) -> (i32, i32) {
    %c0_i32 = arith.constant 0 : i32
    %c0_i32_0 = arith.constant 0 : i32
    %c0_i32_1 = arith.constant 0 : i32
    return %c0_i32, %c0_i32_0 : i32, i32
  }
  func.func @transform_4(%arg0: i32) -> (i32, i32) {
    %c0_i32 = arith.constant 0 : i32
    %c0_i32_0 = arith.constant 0 : i32
    %c0_i32_1 = arith.constant 0 : i32
    return %c0_i32, %c0_i32_0 : i32, i32
  }
  func.func @transform_5(%arg0: i32) -> (i32, i32) {
    %c0_i32 = arith.constant 0 : i32
    %c0_i32_0 = arith.constant 0 : i32
    %c0_i32_1 = arith.constant 0 : i32
    return %c0_i32, %c0_i32_0 : i32, i32
  }
  func.func @transform_6(%arg0: i32) -> (i32, i32) {
    %c0_i32 = arith.constant 0 : i32
    %c0_i32_0 = arith.constant 0 : i32
    %c0_i32_1 = arith.constant 0 : i32
    return %c0_i32, %c0_i32_0 : i32, i32
  }
  func.func @transform_7(%arg0: i32) -> (i32, i32) {
    %c0_i32 = arith.constant 0 : i32
    %c0_i32_0 = arith.constant 0 : i32
    %c0_i32_1 = arith.constant 0 : i32
    return %c0_i32, %c0_i32_0 : i32, i32
  }
  func.func @transform_8(%arg0: i32) -> (i32, i32) {
    %c0_i32 = arith.constant 0 : i32
    %c0_i32_0 = arith.constant 0 : i32
    %c0_i32_1 = arith.constant 0 : i32
    return %c0_i32, %c0_i32_0 : i32, i32
  }
  func.func @transform_9(%arg0: i32) -> (i32, i32) {
    %c0_i32 = arith.constant 0 : i32
    %c0_i32_0 = arith.constant 0 : i32
    %c0_i32_1 = arith.constant 0 : i32
    return %c0_i32, %c0_i32_0 : i32, i32
  }
  func.func @transform_10(%arg0: i32) -> (i32, i32) {
    %c0_i32 = arith.constant 0 : i32
    %c0_i32_0 = arith.constant 0 : i32
    return %arg0, %c0_i32 : i32, i32
  }
}

</mosaic_0001>

<bundles_post_ra>
// kernel: dycls_forward.1
= control target key start
LH: loop header
LB: loop body
LE: loop exit
PB: predicated region body
PF: predicated region fallthrough
CT: control target
= control target key end

     0   :  { %15 = vsyncpa [#allocation3], 0  ;;  %s3934_s0 = inlined_call_operand.vmem [shape: f32[16,64], index: 0, kind: input, shape index: {}]   ;;  %s3935_s1 = inlined_call_operand.vmem [shape: bf16[64,32], index: 1, kind: input, shape index: {}]   ;;  %s3936_s2 = inlined_call_operand.vmem [shape: bf16[32,32], index: 2, kind: input, shape index: {}]   ;;  %s3937_s3 = inlined_call_operand.hbm [shape: bf16[32,1024], index: 3, kind: input, shape index: {}]   ;;  %s3938_s4 = inlined_call_operand.vmem [shape: bf16[32,128], index: 4, kind: input, shape index: {}]   ;;  %s3939_s5 = inlined_call_operand.vmem [shape: bf16[64,128], index: 5, kind: input, shape index: {}]   ;;  %s3940_s6 = inlined_call_operand.vmem [shape: f32[1,128], index: 6, kind: input, shape index: {}]   ;;  %s3941_s7 = inlined_call_operand.vmem [shape: bf16[64,32], index: 7, kind: input, shape index: {}]   ;;  %s3942_s8 = inlined_call_operand.vmem [shape: bf16[32,128], index: 8, kind: input, shape index: {}]   ;;  %s3943_s9 = inlined_call_operand.hbm [shape: f32[4,32], index: 9, kind: input, shape index: {}]   ;;  %s3944_s10 = inlined_call_operand.hbm [shape: f32[16,128], index: 10, kind: output, shape index: {}]  }
   0x1   :  { %16 = vsyncpa [#allocation6], 0 }
   0x2   :  { %17 = vsyncpa [#allocation4], 0  ;;  %s2338_s13 = smov [#allocation2]   ;;  %s2266_s17 = scalar_lea.hbm %s3937_s3, 2048 }
   0x3   :  { %s29_s14 = sshll.u32 %s2338_s13, 4  ;;  %p2267_p0 = scmp.ne.s32.totalorder %s3937_s3, %s2266_s17  ;;  %s30_s14 = int_to_ptr.vmem [resolvable:$true] %s29_s14 }
   0x4   :  { %p2270_p1 = scmp.lt.u32.totalorder %s2266_s17, %s3937_s3 }
   0x6   :  { %p2272_p2 = pnand %p2270_p1, %p2267_p0 }
   0x8   :  { %2275 = shalt.err (!%p2272_p2)
}
   0x9   :  { %s2276_s22 = scalar_lea.vmem %s30_s14, 2048  ;;  %p2281_p4 = scmp.lt.s32.totalorder %s30_s14, %s30_s14 }
   0xa   :  { %p2277_p3 = scmp.ne.s32.totalorder %s30_s14, %s2276_s22  ;;  %p2282_p5 = scmp.lt.s32.totalorder %s2276_s22, %s2276_s22 }
   0xc   :  { %p2283_p6 = por %p2282_p5, %p2281_p4 }
   0xe   :  { %p2284_p7 = pnand %p2283_p6, %p2277_p3 }
  0x10   :  { %2287 = shalt.err (!%p2284_p7)
}
  0x11   :  { %s2339_s23 = smov 512   ;;  %s2340_s24 = smov 32  }
  0x12   :  { %35 = dma.hbm_to_vmem [thread:$0]  %s3937_s3, 2048, %s30_s14, [#allocation3], %s2339_s23, %s2339_s23, %s2340_s24  }
  0x13   :  { %s2341_s27 = smov [#allocation5]   ;;  %s2288_s11 = scalar_lea.hbm %s3943_s9, 64 }
  0x14   :  { %s52_s28 = sshll.u32 %s2341_s27, 4  ;;  %p2289_p8 = scmp.ne.s32.totalorder %s3943_s9, %s2288_s11  ;;  %s53_s28 = int_to_ptr.vmem [resolvable:$true] %s52_s28 }
  0x15   :  { %p2292_p9 = scmp.lt.u32.totalorder %s2288_s11, %s3943_s9 }
  0x17   :  { %p2294_p10 = pnand %p2292_p9, %p2289_p8 }
  0x19   :  { %2297 = shalt.err (!%p2294_p10)
}
  0x1a   :  { %s2298_s17 = scalar_lea.vmem %s53_s28, 64  ;;  %p2303_p12 = scmp.lt.s32.totalorder %s53_s28, %s53_s28 }
  0x1b   :  { %p2299_p11 = scmp.ne.s32.totalorder %s53_s28, %s2298_s17  ;;  %p2304_p13 = scmp.lt.s32.totalorder %s2298_s17, %s2298_s17 }
  0x1d   :  { %p2305_p0 = por %p2304_p13, %p2303_p12 }
  0x1f   :  { %p2306_p1 = pnand %p2305_p0, %p2299_p11 }
  0x21   :  { %2309 = shalt.err (!%p2306_p1)
}
  0x22   :  { %55 = dma.hbm_to_vmem [thread:$0]  %s3943_s9, 64, %s53_s28, [#allocation6]  }
  0x23   :  { %2332 = dma.done.wait [#allocation3], 2048  }
  0x24   :  { %2333 = vsyncadd [#allocation3], 4294965248 }
  0x25   :  { %2334 = dma.done.wait [#allocation6], 64  }
  0x26   :  { %2335 = vsyncadd [#allocation6], 4294967232  ;;  %v3969_v0 = vmov 0.0   ;;  %vm3945_vm0 = vmmov 0   ;;  %v2248_v1 = vld [vmem:[%s3935_s1] sm:$0xff]   ;;  %v2249_v2 = vld [vmem:[%s3935_s1 + $0x8] sm:$0xff]  }
  0x27   :  { %2177 = vmatprep.subr.bf16.mxu0 %v3969_v0  ;;  %2185 = vmatprep.mubr.msk.bf16.mxu0 %vm3945_vm0, %v3969_v0  ;;  %v2250_v3 = vld [vmem:[%s3935_s1 + $0x10] sm:$0xff]   ;;  %v2252_v4 = vld [vmem:[%s3936_s2] sm:$0xff]   ;;  %v2251_v5 = vld [vmem:[%s3935_s1 + $0x18] sm:$0xff]   ;;  %vm98_vm1 = vcmask 523264   ;;  %vm3946_vm2 = vcmask 261120   ;;  %v2344_v39 = vmov 0  }
  0x28   :  { %2189 = vmatprep.subr.bf16.mxu1 %v3969_v0  ;;  %2193 = vmatprep.mubr.msk.bf16.mxu1 %vm3945_vm0, %v3969_v0  ;;  %v63_v6 = vld [vmem:[%s3934_s0] sm:$0xff]  ;;  %v64_v7 = vld [vmem:[%s3934_s0 + $0x8] sm:$0xff]  ;;  %v216_v31 = vld [vmem:[#allocation2 + $0x10] sm:$0xff] }
  0x29   :  { %2178 = vmatpush3.bf16.msra.mxu0 %v2248_v1  ;;  %2190 = vmatpush3.bf16.msra.mxu1 %v2252_v4  ;;  %v2459_v8 = vpack.c.bf16 %v64_v7, %v63_v6  ;;  %v2253_v9 = vld [vmem:[%s3936_s2 + $0x8] sm:$0xff]   ;;  %v214_v15 = vld [vmem:[#allocation2] sm:$0xff]  ;;  %v220_v32 = vld [vmem:[#allocation2 + $0x30] sm:$0xff] }
  0x2a   :  { %2179 = vmatprep.subr.bf16.mxu0 %v3969_v0  ;;  %2191 = vmatprep.subr.bf16.mxu1 %v3969_v0  ;;  %v218_v16 = vld [vmem:[#allocation2 + $0x20] sm:$0xff]  ;;  %v215_v17 = vld [vmem:[#allocation2 + $0x8] sm:$0xff]  ;;  %v217_v33 = vld [vmem:[#allocation2 + $0x18] sm:$0xff]  ;;  %v1865_v34 = vcombine.high %v216_v31, %v220_v32  ;;  %v1864_v36 = vcombine.low %v216_v31, %v220_v32 }
  0x2b   :  { %v1861_v18 = vcombine.high %v214_v15, %v218_v16  ;;  %v219_v19 = vld [vmem:[#allocation2 + $0x28] sm:$0xff]  ;;  %v1860_v20 = vcombine.low %v214_v15, %v218_v16  ;;  %v222_v23 = vld [vmem:[#allocation2 + $0x40] sm:$0xff]  ;;  %v221_v35 = vld [vmem:[#allocation2 + $0x38] sm:$0xff] }
  0x2c   :  { %v1862_v21 = vcombine.low %v215_v17, %v219_v19  ;;  %v1863_v22 = vcombine.high %v215_v17, %v219_v19  ;;  %v226_v24 = vld [vmem:[#allocation2 + $0x60] sm:$0xff]  ;;  %v223_v25 = vld [vmem:[#allocation2 + $0x48] sm:$0xff]  ;;  %v1866_v37 = vcombine.low %v217_v33, %v221_v35  ;;  %v1867_v38 = vcombine.high %v217_v33, %v221_v35  ;;  %v224_v53 = vld [vmem:[#allocation2 + $0x50] sm:$0xff] }
  0x2d   :  { %2180 = vmatpush3.bf16.msra.mxu0 %v2249_v2  ;;  %2192 = vmatpush3.bf16.msra.mxu1 %v2253_v9  ;;  %v1869_v26 = vcombine.high %v222_v23, %v226_v24  ;;  %v227_v27 = vld [vmem:[#allocation2 + $0x68] sm:$0xff]  ;;  %v1868_v28 = vcombine.low %v222_v23, %v226_v24  ;;  %v228_v54 = vld [vmem:[#allocation2 + $0x70] sm:$0xff]  ;;  %v225_v55 = vld [vmem:[#allocation2 + $0x58] sm:$0xff]  ;;  %v4010_v35 = vmov 0 }
  0x2e   :  { %2181 = vmatprep.subr.bf16.mxu0 %v3969_v0  ;;  %313 = vmatprep.subr.bf16.mxu1 %v1861_v18  ;;  %v1870_v29 = vcombine.low %v223_v25, %v227_v27  ;;  %v1871_v30 = vcombine.high %v223_v25, %v227_v27  ;;  %v229_v56 = vld [vmem:[#allocation2 + $0x78] sm:$0xff]  ;;  %v1873_v59 = vcombine.high %v224_v53, %v228_v54  ;;  %v2254_v63 = vld [vmem:[%s3938_s4] sm:$0xff]   ;;  %v2256_v2 = vld [vmem:[%s3938_s4 + $0x8] sm:$0xff]  }
  0x2f   :  { %v1875_v60 = vcombine.high %v225_v55, %v229_v56  ;;  %v1872_v61 = vcombine.low %v224_v53, %v228_v54  ;;  %v1874_v62 = vcombine.low %v225_v55, %v229_v56  ;;  %v2255_v1 = vld [vmem:[%s3939_s5] sm:$0xff]   ;;  %v2258_v4 = vld [vmem:[%s3939_s5 + $0x10] sm:$0xff]   ;;  %v2260_v6 = vld [vmem:[%s3939_s5 + $0x18] sm:$0xff]  }
  0x30   :  { %v2261_v7 = vld [vmem:[%s3941_s7 + $0x8] sm:$0xff]   ;;  %v2262_v9 = vld [vmem:[%s3941_s7 + $0x10] sm:$0xff]  }
  0x31   :  { %2182 = vmatpush3.bf16.msra.mxu0 %v2250_v3  ;;  %v2257_v3 = vld [vmem:[%s3939_s5 + $0x8] sm:$0xff]  }
  0x32   :  { %2183 = vmatprep.subr.bf16.mxu0 %v3969_v0 }
  0x35   :  { %2184 = vmatpush3.bf16.msra.mxu0 %v2251_v5  ;;  %v2259_v5 = vld [vmem:[%s3941_s7] sm:$0xff]  }
  0x36   :  { %356 = vmatprep.subr.bf16.mxu0 %v1863_v22 }
  0x38   :  { %2186 = vmatmul.mubr.msk.bf16.vlgmr.msra.gmra.mrb[0].mxu0 %vm98_vm1, %v2459_v8 }
  0x39   :  { %357 = vmatpush1.bf16.msra.mxu0 %v1862_v21  ;;  %388 = vmatprep.mubr.bf16.mxu0 %v2344_v39  ;;  %v3971_v21 = vmov 1.0|1.0  }
  0x3a   :  { %358 = vmatprep.subr.bf16.mxu0 %v1871_v30 }
  0x3d   :  { %359 = vmatpush1.bf16.msra.mxu0 %v1870_v29 }
  0x3e   :  { %442 = vmatprep.subr.bf16.mxu0 %v1867_v38  ;;  %v4012_v38 = vmov 0 }
 0x10b   :  { %v136_v10 = vpop.f32.mrb[0].mxu0 }
 0x10c   :  { %v2187_v11 = vpop.f32.mrb[1].mxu0 }
 0x10d   :  { %v139_v12 = vpop.f32.mrb[2].mxu0  ;;  %v717_v11 = vlaneseq }
 0x10e   :  { %v143_v13 = vpack.c.bf16 %v139_v12, %v136_v10  ;;  %v2188_v14 = vpop.f32.mrb[3].mxu0 }
 0x110   :  { %2194 = vmatmul.mubr.msk.bf16.vlgmr.msra.gmra.mrb[0].mxu1 %vm3946_vm2, %v143_v13  ;;  %v2530_v13 = vshrl.u32 %v717_v11, 7 }
 0x111   :  { %314 = vmatpush1.bf16.msra.mxu1 %v1860_v20  ;;  %345 = vmatprep.mubr.bf16.mxu1 %v2344_v39 }
 0x112   :  { %315 = vmatprep.subr.bf16.mxu1 %v1869_v26  ;;  %v2536_v17 = vadd.s32 8, %v2530_v13  ;;  %v720_v22 = vadd.s32 16, %v2530_v13  ;;  %v721_v23 = vadd.s32 24, %v2530_v13 }
 0x115   :  { %316 = vmatpush1.bf16.msra.mxu1 %v1868_v28 }
 0x116   :  { %399 = vmatprep.subr.bf16.mxu1 %v1865_v34  ;;  %v839_v34 = vadd.s32 192, %v2530_v13 }
 0x1e3   :  { %v198_v40 = vpop.f32.mrb[0].mxu1 }
 0x1e4   :  { %v199_v41 = vadd.f32 3.0, %v198_v40  ;;  %v2195_v42 = vpop.f32.mrb[1].mxu1  ;;  %v4014_v40 = vmov 0 }
 0x1e5   :  { %v201_v43 = vpop.f32.mrb[2].mxu1 }
 0x1e6   :  { %v205_v44 = vmax.f32 %v199_v41, 0.0  ;;  %v202_v45 = vadd.f32 3.0, %v201_v43  ;;  %v2196_v46 = vpop.f32.mrb[3].mxu1 }
 0x1e8   :  { %v207_v47 = vmin.f32 %v205_v44, 6.0  ;;  %v206_v48 = vmax.f32 %v202_v45, 0.0 }
 0x1ea   :  { %v209_v49 = vmul.f32 0.33333334, %v207_v47  ;;  %v208_v50 = vmin.f32 %v206_v48, 6.0 }
 0x1ec   :  { %v211_v51 = vmul.f32 %v209_v49, %v136_v10  ;;  %v210_v52 = vmul.f32 0.33333334, %v208_v50  ;;  %v2263_v10 = vld [vmem:[%s3941_s7 + $0x18] sm:$0xff]  }
 0x1ee   :  { %v212_v57 = vmul.f32 %v210_v52, %v139_v12  ;;  %v2528_v12 = vand.u32 127, %v717_v11  ;;  %v831_v11 = vadd.s32 128, %v2530_v13 }
 0x1f0   :  { %v213_v58 = vpack.c.bf16 %v212_v57, %v211_v51  ;;  %v724_v14 = vadd.s32 128, %v2528_v12  ;;  %v726_v15 = vadd.s32 384, %v2528_v12  ;;  %v725_v16 = vadd.s32 256, %v2528_v12 }
 0x1f1   :  { %v728_v24 = vadd.s32 640, %v2528_v12  ;;  %v730_v25 = vadd.s32 896, %v2528_v12  ;;  %v727_v26 = vadd.s32 512, %v2528_v12  ;;  %v729_v29 = vadd.s32 768, %v2528_v12 }
 0x1f2   :  { %1876 = vmatmul.mubr.msk.bf16.vlgmr.msra.gmra.mrb[4].mxu1 %vm3946_vm2, %v213_v58  ;;  %1877 = vmatmul.mubr.msk.bf16.vlgmr.msra.gmra.mrb[4].mxu0 %vm3946_vm2, %v213_v58  ;;  %v732_v18 = vand.u32 31, %v724_v14  ;;  %v734_v19 = vand.u32 31, %v726_v15  ;;  %v733_v20 = vand.u32 31, %v725_v16  ;;  %v832_v14 = vadd.s32 136, %v2530_v13 }
 0x1f3   :  { %400 = vmatpush1.bf16.msra.mxu1 %v1864_v36  ;;  %443 = vmatpush1.bf16.msra.mxu0 %v1866_v37  ;;  %v736_v27 = vand.u32 31, %v728_v24  ;;  %v738_v28 = vand.u32 31, %v730_v25  ;;  %v2565_v30 = vand.u32 31, %v727_v26  ;;  %v2569_v31 = vand.u32 31, %v729_v29 }
 0x1f4   :  { %401 = vmatprep.subr.bf16.mxu1 %v1873_v59  ;;  %444 = vmatprep.subr.bf16.mxu0 %v1875_v60  ;;  %vm740_vm3 = vcmp.eq.s32.totalorder %v732_v18, %v2530_v13  ;;  %vm748_vm4 = vcmp.eq.s32.totalorder %v732_v18, %v2536_v17  ;;  %vm742_vm5 = vcmp.eq.s32.totalorder %v734_v19, %v2530_v13  ;;  %v945_v36 = vshra.s32 %v720_v22, 5 }
 0x1f5   :  { %431 = vmatprep.mubr.bf16.mxu1 %v2344_v39  ;;  %474 = vmatprep.mubr.bf16.mxu0 %v2344_v39  ;;  %vm750_vm6 = vcmp.eq.s32.totalorder %v734_v19, %v2536_v17  ;;  %vm1896_vm7 = vmpackc.low %vm748_vm4, %vm740_vm3  ;;  %vm741_vm10 = vcmp.eq.s32.totalorder %v733_v20, %v2530_v13  ;;  %vm749_vm12 = vcmp.eq.s32.totalorder %v733_v20, %v2536_v17  ;;  %v946_v37 = vshra.s32 %v721_v23, 5 }
 0x1f6   :  { %vm1905_vm13 = vmpackc.low %vm750_vm6, %vm742_vm5  ;;  %vm756_vm15 = vcmp.eq.s32.totalorder %v732_v18, %v720_v22  ;;  %vm758_vm3 = vcmp.eq.s32.totalorder %v734_v19, %v720_v22  ;;  %vm766_vm4 = vcmp.eq.s32.totalorder %v734_v19, %v721_v23  ;;  %v863_v16 = vadd.s32 384, %v2530_v13 }
 0x1f7   :  { %402 = vmatpush1.bf16.msra.mxu1 %v1872_v61  ;;  %445 = vmatpush1.bf16.msra.mxu0 %v1874_v62  ;;  %vm1907_vm14 = vmpackc.low %vm749_vm12, %vm741_vm10  ;;  %vm744_vm10 = vcmp.eq.s32.totalorder %v736_v27, %v2530_v13  ;;  %vm752_vm12 = vcmp.eq.s32.totalorder %v736_v27, %v2536_v17  ;;  %v833_v24 = vadd.s32 144, %v2530_v13  ;;  %v834_v25 = vadd.s32 152, %v2530_v13 }
 0x1f8   :  { %2197 = vmatprep.subr.bf16.mxu1 %v3969_v0  ;;  %2205 = vmatprep.subr.bf16.mxu0 %v3969_v0  ;;  %vm1909_vm5 = vmpackc.low %vm766_vm4, %vm758_vm3  ;;  %vm762_vm3 = vcmp.eq.s32.totalorder %v738_v28, %v720_v22  ;;  %vm770_vm4 = vcmp.eq.s32.totalorder %v738_v28, %v721_v23  ;;  %v959_v26 = vshra.s32 %v831_v11, 5  ;;  %v1895_v11 = vld [vmem:[#allocation5 + $0x1] ss:$0 sm:$0xff] }
 0x1fa   :  { %1878 = vmatmul.mubr.msk.bf16.vlgmr.msra.gmra.mrb[8].mxu1 %vm3946_vm2, %v213_v58  ;;  %1879 = vmatmul.mubr.msk.bf16.vlgmr.msra.gmra.mrb[8].mxu0 %vm3946_vm2, %v213_v58 }
 0x1fb   :  { %2198 = vmatpush3.bf16.msra.mxu1 %v2254_v63  ;;  %2206 = vmatpush3.bf16.msra.mxu0 %v2255_v1 }
 0x1fc   :  { %2199 = vmatprep.subr.bf16.mxu1 %v3969_v0  ;;  %2207 = vmatprep.subr.bf16.mxu0 %v3969_v0 }
 0x1fd   :  { %2201 = vmatprep.mubr.msk.bf16.mxu1 %vm3945_vm0, %v3969_v0  ;;  %2213 = vmatprep.mubr.msk.bf16.mxu0 %vm3945_vm0, %v3969_v0 }
 0x1ff   :  { %2200 = vmatpush3.bf16.msra.mxu1 %v2256_v2  ;;  %2208 = vmatpush3.bf16.msra.mxu0 %v2257_v3  ;;  %v1883_v3 = vld [vmem:[%s3940_s6] ss:$0 sm:$0xff] }
 0x200   :  { %2209 = vmatprep.subr.bf16.mxu0 %v3969_v0  ;;  %2217 = vmatprep.subr.bf16.mxu1 %v3969_v0 }
 0x202   :  { %2202 = vmatmul.mubr.msk.bf16.vlgmr.msra.gmra.mrb[12].mxu1 %vm3946_vm2, %v213_v58  ;;  %vm765_vm2 = vcmp.eq.s32.totalorder %v733_v20, %v721_v23 }
 0x203   :  { %2210 = vmatpush3.bf16.msra.mxu0 %v2258_v4  ;;  %2218 = vmatpush3.bf16.msra.mxu1 %v2259_v5 }
 0x204   :  { %2211 = vmatprep.subr.bf16.mxu0 %v3969_v0  ;;  %2219 = vmatprep.subr.bf16.mxu1 %v3969_v0 }
 0x205   :  { %2225 = vmatprep.mubr.msk.bf16.mxu1 %vm3945_vm0, %v3969_v0  ;;  %vm757_vm0 = vcmp.eq.s32.totalorder %v733_v20, %v720_v22  ;;  %v848_v20 = vadd.s32 264, %v2530_v13 }
 0x206   :  { %vm1911_vm6 = vmpackc.low %vm765_vm2, %vm757_vm0  ;;  %vm760_vm2 = vcmp.eq.s32.totalorder %v736_v27, %v720_v22 }
 0x207   :  { %2212 = vmatpush3.bf16.msra.mxu0 %v2260_v6  ;;  %2220 = vmatpush3.bf16.msra.mxu1 %v2261_v7 }
 0x208   :  { %2221 = vmatprep.subr.bf16.mxu1 %v3969_v0  ;;  %1897 = vmatprep.subr.msk.bf16.mxu0 %vm1896_vm7, %v3971_v21 }
 0x20a   :  { %2214 = vmatmul.mubr.msk.bf16.vlgmr.msra.gmra.mrb[12].mxu0 %vm98_vm1, %v2459_v8 }
 0x20b   :  { %2222 = vmatpush3.bf16.msra.mxu1 %v2262_v9  ;;  %1427 = vmatprep.mubr.bf16.mxu0 %v2344_v39 }
 0x20c   :  { %2223 = vmatprep.subr.bf16.mxu1 %v3969_v0  ;;  %v3392_v0 = vadd.s32 576, %v2530_v13 }
 0x20f   :  { %2224 = vmatpush3.bf16.msra.mxu1 %v2263_v10 }
 0x210   :  { %1906 = vmatprep.subr.msk.bf16.mxu1 %vm1905_vm13, %v3971_v21  ;;  %vm746_vm13 = vcmp.eq.s32.totalorder %v738_v28, %v2530_v13 }
 0x212   :  { %2226 = vmatmul.mubr.msk.bf16.vlgmr.msra.gmra.mrb[16].mxu1 %vm98_vm1, %v2459_v8  ;;  %v731_v8 = vand.u32 31, %v2528_v12  ;;  %vm764_vm1 = vcmp.eq.s32.totalorder %v732_v18, %v721_v23  ;;  %v864_v18 = vadd.s32 392, %v2530_v13 }
 0x213   :  { %1470 = vmatprep.mubr.bf16.mxu1 %v2344_v39  ;;  %1908 = vmatpush1.bf16.msk.msra.mxu1 %vm1907_vm14, %v3971_v21  ;;  %vm1900_vm7 = vmpackc.low %vm764_vm1, %vm756_vm15  ;;  %vm754_vm14 = vcmp.eq.s32.totalorder %v738_v28, %v2536_v17  ;;  %vm768_vm1 = vcmp.eq.s32.totalorder %v736_v27, %v721_v23  ;;  %v960_v27 = vshra.s32 %v832_v14, 5  ;;  %v865_v28 = vadd.s32 400, %v2530_v13 }
 0x214   :  { %vm739_vm8 = vcmp.eq.s32.totalorder %v731_v8, %v2530_v13  ;;  %vm747_vm9 = vcmp.eq.s32.totalorder %v731_v8, %v2536_v17  ;;  %1910 = vmatprep.subr.msk.bf16.mxu1 %vm1909_vm5, %v3971_v21  ;;  %vm1914_vm15 = vmpackc.low %vm752_vm12, %vm744_vm10  ;;  %vm769_vm5 = vcmp.eq.s32.totalorder %v2569_v31, %v721_v23 }
 0x215   :  { %vm1898_vm11 = vmpackc.low %vm747_vm9, %vm739_vm8  ;;  %vm755_vm8 = vcmp.eq.s32.totalorder %v731_v8, %v720_v22  ;;  %vm763_vm9 = vcmp.eq.s32.totalorder %v731_v8, %v721_v23  ;;  %v847_v8 = vadd.s32 256, %v2530_v13 }
 0x216   :  { %1899 = vmatpush1.bf16.msk.msra.mxu0 %vm1898_vm11, %v3971_v21  ;;  %vm1902_vm11 = vmpackc.low %vm763_vm9, %vm755_vm8  ;;  %vm767_vm8 = vcmp.eq.s32.totalorder %v2565_v30, %v721_v23 }
 0x217   :  { %1901 = vmatprep.subr.msk.bf16.mxu0 %vm1900_vm7, %v3971_v21  ;;  %1912 = vmatpush1.bf16.msk.msra.mxu1 %vm1911_vm6, %v3971_v21  ;;  %vm1923_vm0 = vmpackc.low %vm754_vm14, %vm746_vm13  ;;  %vm759_vm7 = vcmp.eq.s32.totalorder %v2565_v30, %v720_v22  ;;  %vm2592_vm13 = vcmp.eq.s32.totalorder %v945_v36, %v2528_v12  ;;  %vm2597_vm14 = vcmp.eq.s32.totalorder %v946_v37, %v2528_v12  ;;  %v1894_v36 = vld [vmem:[#allocation5] ss:$0 sm:$0xff]  ;;  %v991_v37 = vshra.s32 %v863_v16, 5 }
 0x218   :  { %1924 = vmatprep.subr.msk.bf16.mxu1 %vm1923_vm0, %v3971_v21  ;;  %vm2573_vm9 = vmpackc.low %vm768_vm1, %vm760_vm2  ;;  %v4013_v38 = vsel %vm2592_vm13, 4294967295, %v4012_v38  ;;  %v4015_v40 = vsel %vm2597_vm14, 4294967295, %v4014_v40  ;;  %vm4042_vm14 = vcmp.eq.s32.totalorder %v2565_v30, %v2530_v13 }
 0x219   :  { %vm2579_vm6 = vmpackc.low %vm770_vm4, %vm762_vm3  ;;  %vm2667_vm4 = vcmp.eq.s32.totalorder %v959_v26, %v2528_v12  ;;  %v4032_v26 = vmov 0 }
 0x21a   :  { %1903 = vmatpush1.bf16.msk.msra.mxu0 %vm1902_vm11, %v3971_v21  ;;  %vm761_vm11 = vcmp.eq.s32.totalorder %v2569_v31, %v720_v22  ;;  %vm2583_vm10 = vmpackc.low %vm767_vm8, %vm759_vm7  ;;  %vm2672_vm7 = vcmp.eq.s32.totalorder %v960_v27, %v2528_v12  ;;  %vm2677_vm8 = vcmp.eq.s32.totalorder %v991_v37, %v2528_v12 }
 0x21b   :  { %1915 = vmatprep.subr.msk.bf16.mxu0 %vm1914_vm15, %v3971_v21  ;;  %vm2587_vm12 = vmpackc.low %vm769_vm5, %vm761_vm11 }
 0x21c   :  { %v4011_v35 = vsel %vm2587_vm12, 4294967295, %v4010_v35 }
 0x2c5   :  { %v2605_v41 = vpop.f32.mrb[4].mxu1  ;;  %v2607_v42 = vpop.f32.mrb[4].mxu0 }
 0x2c6   :  { %v2609_v43 = vpop.f32.mrb[5].mxu1  ;;  %v2611_v44 = vpop.f32.mrb[5].mxu0 }
 0x2c7   :  { %v2613_v45 = vpop.f32.mrb[6].mxu1  ;;  %v2615_v46 = vpop.f32.mrb[6].mxu0 }
 0x2c8   :  { %v2617_v47 = vpop.f32.mrb[7].mxu1  ;;  %v2619_v48 = vpop.f32.mrb[7].mxu0 }
 0x2cd   :  { %v2621_v49 = vpop.f32.mrb[8].mxu1  ;;  %v2623_v50 = vpop.f32.mrb[8].mxu0 }
 0x2ce   :  { %v2625_v51 = vpop.f32.mrb[9].mxu1  ;;  %v2627_v52 = vpop.f32.mrb[9].mxu0 }
 0x2cf   :  { %v2629_v53 = vpop.f32.mrb[10].mxu1  ;;  %v2631_v54 = vpop.f32.mrb[10].mxu0 }
 0x2d0   :  { %v2633_v55 = vpop.f32.mrb[11].mxu1  ;;  %v2635_v56 = vpop.f32.mrb[11].mxu0 }
 0x2d5   :  { %v535_v57 = vpop.f32.mrb[12].mxu1 }
 0x2d6   :  { %v536_v58 = vadd.f32 3.0, %v535_v57  ;;  %v2203_v59 = vpop.f32.mrb[13].mxu1  ;;  %v992_v57 = vshra.s32 %v864_v18, 5  ;;  %v824_v18 = vadd.s32 72, %v2530_v13 }
 0x2d7   :  { %v538_v60 = vpop.f32.mrb[14].mxu1  ;;  %v944_v59 = vshra.s32 %v2536_v17, 5 }
 0x2d8   :  { %v542_v61 = vmax.f32 %v536_v58, 0.0  ;;  %v539_v62 = vadd.f32 3.0, %v538_v60  ;;  %v2204_v63 = vpop.f32.mrb[15].mxu1  ;;  %v943_v58 = vshra.s32 %v2530_v13, 5  ;;  %v975_v60 = vshra.s32 %v847_v8, 5 }
 0x2d9   :  { %vm2682_vm11 = vcmp.eq.s32.totalorder %v992_v57, %v2528_v12  ;;  %vm2692_vm15 = vcmp.eq.s32.totalorder %v944_v59, %v2528_v12  ;;  %v835_v8 = vadd.s32 160, %v2530_v13 }
 0x2da   :  { %v544_v1 = vmin.f32 %v542_v61, 6.0  ;;  %v543_v2 = vmax.f32 %v539_v62, 0.0  ;;  %v976_v61 = vshra.s32 %v848_v20, 5  ;;  %v866_v62 = vadd.s32 408, %v2530_v13 }
 0x2db   :  { %vm2687_vm5 = vcmp.eq.s32.totalorder %v943_v58, %v2528_v12  ;;  %v836_v20 = vadd.s32 168, %v2530_v13  ;;  %vm2699_vm3 = vcmp.eq.s32.totalorder %v975_v60, %v2528_v12  ;;  %v4040_v60 = vmov 0 }
 0x2dc   :  { %v546_v4 = vmul.f32 0.33333334, %v544_v1  ;;  %v545_v5 = vmin.f32 %v543_v2, 6.0  ;;  %v961_v1 = vshra.s32 %v833_v24, 5  ;;  %v962_v2 = vshra.s32 %v834_v25, 5 }
 0x2dd   :  { %v621_v6 = vpop.f32.mrb[12].mxu0  ;;  %v4030_v25 = vmov 0  ;;  %vm2704_vm1 = vcmp.eq.s32.totalorder %v976_v61, %v2528_v12  ;;  %v994_v27 = vshra.s32 %v866_v62, 5  ;;  %v867_v61 = vadd.s32 416, %v2530_v13 }
 0x2de   :  { %v547_v7 = vmul.f32 0.33333334, %v545_v5  ;;  %v622_v9 = vadd.f32 %v1883_v3, %v621_v6  ;;  %v2215_v10 = vpop.f32.mrb[13].mxu0  ;;  %v4031_v25 = vsel %vm2699_vm3, 4294967295, %v4030_v25  ;;  %v4033_v26 = vsel %vm2704_vm1, 4294967295, %v4032_v26 }
 0x2df   :  { %v624_v15 = vpop.f32.mrb[14].mxu0  ;;  %v993_v10 = vshra.s32 %v865_v28, 5  ;;  %vm2709_vm2 = vcmp.eq.s32.totalorder %v961_v1, %v2528_v12  ;;  %v4034_v28 = vmov 0  ;;  %vm2714_vm0 = vcmp.eq.s32.totalorder %v962_v2, %v2528_v12 }
 0x2e0   :  { %v625_v19 = vadd.f32 %v1883_v3, %v624_v15  ;;  %v2216_v22 = vpop.f32.mrb[15].mxu0  ;;  %v2648_v23 = vmul.f32 %v622_v9, %v546_v4  ;;  %v849_v3 = vadd.s32 272, %v2530_v13  ;;  %v850_v4 = vadd.s32 280, %v2530_v13 }
 0x2e1   :  { %v4035_v28 = vsel %vm2709_vm2, 4294967295, %v4034_v28  ;;  %vm2723_vm13 = vcmp.eq.s32.totalorder %v993_v10, %v2528_v12  ;;  %v868_v62 = vadd.s32 424, %v2530_v13  ;;  %v963_v1 = vshra.s32 %v835_v8, 5 }
 0x2e2   :  { %4016 = vst [vmem:[#allocation11_spill] sm:$0xff] %v2648_v23  ;;  %v2657_v29 = vmul.f32 %v625_v19, %v547_v7  ;;  %v977_v37 = vshra.s32 %v849_v3, 5  ;;  %v978_v57 = vshra.s32 %v850_v4, 5  ;;  %v4041_v60 = vsel %vm2723_vm13, 4294967295, %v4040_v60 }
 0x2e3   :  { %v964_v2 = vshra.s32 %v836_v20, 5  ;;  %v819_v3 = vadd.s32 32, %v2530_v13  ;;  %v820_v4 = vadd.s32 40, %v2530_v13  ;;  %vm4046_vm13 = vcmp.eq.s32.totalorder %v2569_v31, %v2530_v13 }
 0x2e4   :  { %4017 = vst [vmem:[#allocation12_spill] sm:$0xff] %v2657_v29  ;;  %vm4047_vm1 = vcmp.eq.s32.totalorder %v2569_v31, %v2536_v17  ;;  %v852_v10 = vadd.s32 296, %v2530_v13  ;;  %vm2762_vm12 = vcmp.eq.s32.totalorder %v978_v57, %v2528_v12  ;;  %v838_v31 = vadd.s32 184, %v2530_v13 }
 0x2e5   :  { %v696_v63 = vpop.f32.mrb[16].mxu1  ;;  %vm1925_vm3 = vmpackc.low %vm4047_vm1, %vm4046_vm13  ;;  %vm4054_vm13 = vcmask 261120   ;;  %v995_v8 = vshra.s32 %v867_v61, 5  ;;  %v996_v20 = vshra.s32 %v868_v62, 5  ;;  %v947_v57 = vshra.s32 %v819_v3, 5 }
 0x2e6   :  { %v708_v5 = vmul.f32 %v1894_v36, %v696_v63  ;;  %v2227_v6 = vpop.f32.mrb[17].mxu1  ;;  %vm4055_vm1 = vmmov %vm4054_vm13  ;;  %v948_v61 = vshra.s32 %v820_v4, 5  ;;  %v980_v63 = vshra.s32 %v852_v10, 5  ;;  %v966_v33 = vshra.s32 %v838_v31, 5 }
 0x2e7   :  { %v699_v14 = vpop.f32.mrb[18].mxu1  ;;  %v851_v6 = vadd.s32 288, %v2530_v13  ;;  %v853_v3 = vadd.s32 304, %v2530_v13  ;;  %v854_v4 = vadd.s32 312, %v2530_v13  ;;  %v4067_v31 = vmov 0 }
 0x2e8   :  { %v709_v22 = vmul.f32 %v1894_v36, %v699_v14  ;;  %v2228_v24 = vpop.f32.mrb[19].mxu1  ;;  %v4036_v36 = vmov 0  ;;  %v2718_v58 = vadd.f32 %v1895_v11, %v708_v5  ;;  %v4052_v14 = vmov 0 }
 0x2e9   :  { %v4037_v36 = vsel %vm2714_vm0, 4294967295, %v4036_v36  ;;  %vm4043_vm0 = vcmp.eq.s32.totalorder %v2565_v30, %v2536_v17  ;;  %v4053_v14 = vsel %vm2762_vm12, 4294967295, %v4052_v14  ;;  %v837_v17 = vadd.s32 176, %v2530_v13 }
 0x2ea   :  { %4038 = vst [vmem:[#allocation13_spill] sm:$0xff] %v2718_v58  ;;  %v2720_v59 = vadd.f32 %v1895_v11, %v709_v22  ;;  %vm2735_vm2 = vmpackc.low %vm4043_vm0, %vm4042_vm14  ;;  %vm2750_vm14 = vcmp.eq.s32.totalorder %v994_v27, %v2528_v12  ;;  %vm2757_vm0 = vcmp.eq.s32.totalorder %v977_v37, %v2528_v12  ;;  %v869_v22 = vadd.s32 432, %v2530_v13 }
 0x2eb   :  { %v870_v24 = vadd.s32 440, %v2530_v13  ;;  %vm2777_vm12 = vcmp.eq.s32.totalorder %v963_v1, %v2528_v12  ;;  %v4056_v27 = vmov 0  ;;  %v4058_v37 = vmov 0 }
 0x2ec   :  { %4039 = vst [vmem:[#allocation14_spill] sm:$0xff] %v2720_v59  ;;  %v1391_v5 = vpack.c.bf16 %v2720_v59, %v2718_v58  ;;  %v4057_v27 = vsel %vm2777_vm12, 4294967295, %v4056_v27  ;;  %v979_v62 = vshra.s32 %v851_v6, 5  ;;  %v821_v1 = vadd.s32 48, %v2530_v13 }
 0x2ed   :  { %v965_v32 = vshra.s32 %v837_v17, 5  ;;  %v4060_v6 = vmov 0  ;;  %v997_v10 = vshra.s32 %v869_v22, 5  ;;  %v998_v17 = vshra.s32 %v870_v24, 5 }
 0x2ee   :  { %1904 = vmatmul.mubr.msk.bf16.vlgmr.msra.gmra.mrb[16].mxu0 %vm4054_vm13, %v1391_v5  ;;  %1913 = vmatmul.mubr.msk.bf16.vlgmr.msra.gmra.mrb[20].mxu1 %vm4055_vm1, %v1391_v5  ;;  %vm2782_vm13 = vcmp.eq.s32.totalorder %v964_v2, %v2528_v12  ;;  %v822_v2 = vadd.s32 56, %v2530_v13  ;;  %vm2816_vm1 = vcmp.eq.s32.totalorder %v996_v20, %v2528_v12  ;;  %vm2859_vm12 = vcmp.eq.s32.totalorder %v979_v62, %v2528_v12 }
 0x2ef   :  { %1917 = vmatpush1.bf16.msk.msra.mxu0 %vm2735_vm2, %v3971_v21  ;;  %1926 = vmatpush1.bf16.msk.msra.mxu1 %vm1925_vm3, %v3971_v21  ;;  %v4059_v37 = vsel %vm2782_vm13, 4294967295, %v4058_v37  ;;  %vm2811_vm3 = vcmp.eq.s32.totalorder %v995_v8, %v2528_v12  ;;  %vm4066_vm2 = vnez %v4033_v26  ;;  %vm2831_vm13 = vcmp.eq.s32.totalorder %v947_v57, %v2528_v12 }
 0x2f0   :  { %1919 = vmatprep.subr.msk.bf16.mxu0 %vm2573_vm9, %v3971_v21  ;;  %1928 = vmatprep.subr.msk.bf16.mxu1 %vm2579_vm6, %v3971_v21  ;;  %v4061_v6 = vsel %vm2811_vm3, 4294967295, %v4060_v6  ;;  %vm4064_vm9 = vnez %v4011_v35  ;;  %vm4065_vm6 = vnez %v4031_v25  ;;  %v4068_v31 = vsel %vm2831_vm13, 4294967295, %v4067_v31 }
 0x2f1   :  { %1513 = vmatprep.mubr.bf16.mxu0 %v2344_v39  ;;  %1556 = vmatprep.mubr.bf16.mxu1 %v2344_v39  ;;  %v4062_v39 = vmov 0  ;;  %v4069_v8 = vmov 0  ;;  %v840_v35 = vadd.s32 200, %v2530_v13  ;;  %vm4073_vm3 = vnez %v4035_v28 }
 0x2f2   :  { %v4063_v39 = vsel %vm2816_vm1, 4294967295, %v4062_v39  ;;  %vm2836_vm1 = vcmp.eq.s32.totalorder %v948_v61, %v2528_v12  ;;  %v4077_v7 = vmov 0  ;;  %v949_v9 = vshra.s32 %v821_v1, 5 }
 0x2f3   :  { %1921 = vmatpush1.bf16.msk.msra.mxu0 %vm2583_vm10, %v3971_v21  ;;  %1930 = vmatpush1.bf16.msk.msra.mxu1 %vm4064_vm9, %v3971_v21  ;;  %v4070_v8 = vsel %vm2836_vm1, 4294967295, %v4069_v8  ;;  %vm4071_vm10 = vmpackc.low %vm2672_vm7, %vm2667_vm4  ;;  %vm4074_vm1 = vnez %v4037_v36  ;;  %vm2864_vm4 = vcmp.eq.s32.totalorder %v980_v63, %v2528_v12  ;;  %v950_v16 = vshra.s32 %v822_v2, 5 }
 0x2f4   :  { %2086 = vmatprep.subr.msk.bf16.mxu0 %vm4071_vm10, %v3971_v21  ;;  %vm4072_vm9 = vmpackc.low %vm2682_vm11, %vm2677_vm8  ;;  %v4078_v7 = vsel %vm2864_vm4, 4294967295, %v4077_v7  ;;  %vm4079_vm7 = vnez %v4041_v60  ;;  %vm2873_vm11 = vcmp.eq.s32.totalorder %v965_v32, %v2528_v12  ;;  %vm2878_vm10 = vcmp.eq.s32.totalorder %v966_v33, %v2528_v12 }
 0x2f5   :  { %2108 = vmatprep.subr.msk.bf16.mxu1 %vm4072_vm9, %v3971_v21  ;;  %v981_v24 = vshra.s32 %v853_v3, 5  ;;  %v982_v57 = vshra.s32 %v854_v4, 5  ;;  %vm4084_vm9 = vcmask 261120   ;;  %vm2885_vm4 = vcmp.eq.s32.totalorder %v997_v10, %v2528_v12 }
 0x2f6   :  { %1922 = vmatmul.mubr.msk.bf16.vlgmr.msra.gmra.mrb[20].mxu0 %vm4084_vm9, %v1391_v5  ;;  %vm4085_vm13 = vmmov %vm4084_vm9  ;;  %v4086_v61 = vmov 0  ;;  %vm2890_vm8 = vcmp.eq.s32.totalorder %v998_v17, %v2528_v12  ;;  %v4088_v62 = vmov 0  ;;  %v871_v63 = vadd.s32 448, %v2530_v13 }
 0x2f7   :  { %1931 = vmatmul.mubr.msk.bf16.vlgmr.msra.gmra.mrb[24].mxu1 %vm4085_vm13, %v1391_v5  ;;  %v4087_v61 = vsel %vm2885_vm4, 4294967295, %v4086_v61  ;;  %v4089_v62 = vsel %vm2890_vm8, 4294967295, %v4088_v62  ;;  %v872_v1 = vadd.s32 456, %v2530_v13  ;;  %vm4090_vm13 = vmpackc.low %vm2692_vm15, %vm2687_vm5  ;;  %vm4092_vm8 = vnez %v4053_v14 }
 0x2f8   :  { %2087 = vmatpush3.bf16.msk.msra.mxu0 %vm4090_vm13, %v3971_v21  ;;  %vm4091_vm9 = vmpackc.low %vm4066_vm2, %vm4065_vm6  ;;  %v967_v5 = vshra.s32 %v839_v34, 5  ;;  %v968_v2 = vshra.s32 %v840_v35, 5  ;;  %v823_v19 = vadd.s32 64, %v2530_v13  ;;  %vm4095_vm2 = vnez %v4057_v27 }
 0x2f9   :  { %2109 = vmatpush3.bf16.msk.msra.mxu1 %vm4091_vm9, %v3971_v21  ;;  %vm4093_vm15 = vmpackc.low %vm4074_vm1, %vm4073_vm3  ;;  %vm4096_vm6 = vnez %v4059_v37  ;;  %vm2931_vm9 = vcmp.eq.s32.totalorder %v949_v9, %v2528_v12  ;;  %v4097_v25 = vmov 0  ;;  %vm2936_vm3 = vcmp.eq.s32.totalorder %v950_v16, %v2528_v12 }
 0x2fa   :  { %2088 = vmatprep.subr.msk.bf16.mxu0 %vm4093_vm15, %v3971_v21  ;;  %vm4094_vm5 = vmpackc.low %vm2750_vm14, %vm4079_vm7  ;;  %v4098_v25 = vsel %vm2931_vm9, 4294967295, %v4097_v25  ;;  %v4099_v26 = vmov 0  ;;  %v855_v28 = vadd.s32 320, %v2530_v13  ;;  %v856_v36 = vadd.s32 328, %v2530_v13 }
 0x2fb   :  { %2110 = vmatprep.subr.msk.bf16.mxu1 %vm4094_vm5, %v3971_v21  ;;  %v4100_v26 = vsel %vm2936_vm3, 4294967295, %v4099_v26  ;;  %vm4101_vm14 = vnez %v4061_v6  ;;  %vm4102_vm1 = vnez %v4063_v39  ;;  %vm2947_vm15 = vcmp.eq.s32.totalorder %v981_v24, %v2528_v12  ;;  %vm4112_vm9 = vmpackc.low %vm4092_vm8, %vm2757_vm0 }
 0x2fc   :  { %v4103_v60 = vmov 0  ;;  %vm2952_vm5 = vcmp.eq.s32.totalorder %v982_v57, %v2528_v12  ;;  %v4105_v30 = vmov 0  ;;  %v841_v32 = vadd.s32 208, %v2530_v13  ;;  %vm4118_vm0 = vmpackc.low %vm4096_vm6, %vm4095_vm2 }
 0x2fd   :  { %v4104_v60 = vsel %vm2947_vm15, 4294967295, %v4103_v60  ;;  %v4106_v30 = vsel %vm2952_vm5, 4294967295, %v4105_v30  ;;  %v842_v33 = vadd.s32 216, %v2530_v13  ;;  %vm4107_vm13 = vnez %v4068_v31  ;;  %2111 = vmatpush3.bf16.msk.msra.mxu1 %vm4112_vm9, %v3971_v21  ;;  %vm4119_vm8 = vmpackc.low %vm4102_vm1, %vm4101_vm14 }
 0x2fe   :  { %v999_v3 = vshra.s32 %v871_v63, 5  ;;  %v1000_v4 = vshra.s32 %v872_v1, 5  ;;  %v873_v10 = vadd.s32 464, %v2530_v13  ;;  %v874_v17 = vadd.s32 472, %v2530_v13  ;;  %2112 = vmatprep.subr.msk.bf16.mxu1 %vm4119_vm8, %v3971_v21  ;;  %vm4129_vm9 = vmmov %vm4107_vm13 }
 0x2ff   :  { %vm4109_vm7 = vnez %v4015_v40  ;;  %vm4110_vm5 = vnez %v4013_v38  ;;  %vm4113_vm3 = vnez %v4078_v7  ;;  %vm2981_vm4 = vcmp.eq.s32.totalorder %v967_v5, %v2528_v12 }
 0x300   :  { %vm4111_vm15 = vmpackc.low %vm4109_vm7, %vm4110_vm5  ;;  %vm2986_vm7 = vcmp.eq.s32.totalorder %v968_v2, %v2528_v12  ;;  %v951_v40 = vshra.s32 %v823_v19, 5  ;;  %v952_v14 = vshra.s32 %v824_v18, 5  ;;  %v983_v11 = vshra.s32 %v855_v28, 5 }
 0x301   :  { %2089 = vmatpush3.bf16.msk.msra.mxu0 %vm4111_vm15, %v3971_v21  ;;  %v984_v35 = vshra.s32 %v856_v36, 5  ;;  %v825_v37 = vadd.s32 80, %v2530_v13  ;;  %v826_v27 = vadd.s32 88, %v2530_v13  ;;  %vm4120_vm2 = vnez %v4087_v61  ;;  %vm4131_vm5 = vmpackc.low %vm4113_vm3, %vm2859_vm12 }
 0x302   :  { %2090 = vmatprep.subr.msk.bf16.mxu0 %vm4118_vm0, %v3971_v21  ;;  %vm4121_vm6 = vnez %v4089_v62  ;;  %v969_v39 = vshra.s32 %v841_v32, 5  ;;  %v970_v6 = vshra.s32 %v842_v33, 5  ;;  %v857_v9 = vadd.s32 336, %v2530_v13  ;;  %2113 = vmatpush3.bf16.msk.msra.mxu1 %vm4131_vm5, %v3971_v21  ;;  %vm4138_vm12 = vmpackc.low %vm2878_vm10, %vm2873_vm11 }
 0x303   :  { %v858_v16 = vadd.s32 344, %v2530_v13  ;;  %vm3019_vm0 = vcmp.eq.s32.totalorder %v999_v3, %v2528_v12  ;;  %v4124_v24 = vmov 0  ;;  %vm3024_vm8 = vcmp.eq.s32.totalorder %v1000_v4, %v2528_v12 }
 0x304   :  { %v4125_v24 = vsel %vm3019_vm0, 4294967295, %v4124_v24  ;;  %v1001_v63 = vshra.s32 %v873_v10, 5  ;;  %v1002_v1 = vshra.s32 %v874_v17, 5  ;;  %vm4128_vm15 = vnez %v4070_v8 }
 0x305   :  { %vm4130_vm13 = vmpackc.low %vm4128_vm15, %vm4129_vm9  ;;  %vm4132_vm14 = vnez %v4104_v60  ;;  %vm4133_vm1 = vnez %v4106_v30  ;;  %vm3045_vm0 = vcmp.eq.s32.totalorder %v951_v40, %v2528_v12  ;;  %vm3050_vm9 = vcmp.eq.s32.totalorder %v952_v14, %v2528_v12 }
 0x306   :  { %2091 = vmatpush3.bf16.msk.msra.mxu0 %vm4130_vm13, %v3971_v21  ;;  %vm4139_vm13 = vmpackc.low %vm4121_vm6, %vm4120_vm2  ;;  %vm3071_vm15 = vcmp.eq.s32.totalorder %v983_v11, %v2528_v12  ;;  %vm3076_vm11 = vcmp.eq.s32.totalorder %v984_v35, %v2528_v12  ;;  %v953_v7 = vshra.s32 %v825_v37, 5  ;;  %v954_v15 = vshra.s32 %v826_v27, 5 }
 0x307   :  { %2092 = vmatprep.subr.msk.bf16.mxu0 %vm4138_vm12, %v3971_v21  ;;  %2114 = vmatprep.subr.msk.bf16.mxu1 %vm4139_vm13, %v3971_v21  ;;  %vm4144_vm10 = vnez %v4125_v24  ;;  %vm4145_vm2 = vmmov %vm3024_vm8  ;;  %vm3085_vm5 = vcmp.eq.s32.totalorder %v969_v39, %v2528_v12  ;;  %vm3090_vm12 = vcmp.eq.s32.totalorder %v970_v6, %v2528_v12  ;;  %v4148_v61 = vmov 0 }
 0x308   :  { %vm1988_vm6 = vmpackc.low %vm4145_vm2, %vm4144_vm10  ;;  %v4149_v61 = vsel %vm3090_vm12, 4294967295, %v4148_v61  ;;  %v985_v62 = vshra.s32 %v857_v9, 5  ;;  %v986_v2 = vshra.s32 %v858_v16, 5  ;;  %vm3099_vm3 = vcmp.eq.s32.totalorder %v1001_v63, %v2528_v12 }
 0x309   :  { %vm1940_vm13 = vmpackc.low %vm3050_vm9, %vm3045_vm0  ;;  %vm3104_vm10 = vcmp.eq.s32.totalorder %v1002_v1, %v2528_v12  ;;  %v4152_v18 = vmov 0  ;;  %vm4154_vm2 = vnez %v4100_v26  ;;  %vm4155_vm8 = vnez %v4098_v25 }
 0x30a   :  { %v4153_v18 = vsel %vm3104_vm10, 4294967295, %v4152_v18  ;;  %vm4156_vm12 = vmpackc.low %vm4154_vm2, %vm4155_vm8  ;;  %vm4159_vm8 = vnez %v4149_v61  ;;  %vm1113_vm2 = vcmp.eq.s32.totalorder %v985_v62, %v2528_v12  ;;  %v843_v25 = vadd.s32 224, %v2530_v13 }
 0x30b   :  { %2093 = vmatpush3.bf16.msk.msra.mxu0 %vm4156_vm12, %v3971_v21  ;;  %vm4157_vm0 = vmpackc.low %vm4133_vm1, %vm4132_vm14  ;;  %vm1081_vm1 = vcmp.eq.s32.totalorder %v953_v7, %v2528_v12  ;;  %vm1082_vm12 = vcmp.eq.s32.totalorder %v954_v15, %v2528_v12  ;;  %v844_v26 = vadd.s32 232, %v2530_v13  ;;  %v875_v28 = vadd.s32 480, %v2530_v13 }
 0x30c   :  { %2115 = vmatpush3.bf16.msk.msra.mxu1 %vm4157_vm0, %v3971_v21  ;;  %vm1972_vm9 = vmpackc.low %vm3076_vm11, %vm3071_vm15  ;;  %vm4160_vm15 = vnez %v4153_v18  ;;  %v876_v36 = vadd.s32 488, %v2530_v13  ;;  %v827_v60 = vadd.s32 96, %v2530_v13  ;;  %v828_v30 = vadd.s32 104, %v2530_v13 }
 0x30d   :  { %vm4158_vm10 = vmpackc.low %vm2986_vm7, %vm2981_vm4  ;;  %2116 = vmatprep.subr.msk.bf16.mxu1 %vm1988_vm6, %v3971_v21  ;;  %vm1114_vm4 = vcmp.eq.s32.totalorder %v986_v2, %v2528_v12  ;;  %v859_v32 = vadd.s32 352, %v2530_v13  ;;  %v860_v33 = vadd.s32 360, %v2530_v13  ;;  %v971_v3 = vshra.s32 %v843_v25, 5 }
 0x30e   :  { %2094 = vmatprep.subr.msk.bf16.mxu0 %vm4158_vm10, %v3971_v21  ;;  %vm1958_vm14 = vmpackc.low %vm4159_vm8, %vm3085_vm5  ;;  %v972_v4 = vshra.s32 %v844_v26, 5  ;;  %v1003_v10 = vshra.s32 %v875_v28, 5  ;;  %v1004_v17 = vshra.s32 %v876_v36, 5  ;;  %v955_v34 = vshra.s32 %v827_v60, 5 }
 0x30f   :  { %vm1990_vm11 = vmpackc.low %vm4160_vm15, %vm3099_vm3  ;;  %2095 = vmatpush3.bf16.msk.msra.mxu0 %vm1940_vm13, %v3971_v21  ;;  %v956_v38 = vshra.s32 %v828_v30, 5  ;;  %v987_v40 = vshra.s32 %v859_v32, 5  ;;  %v988_v14 = vshra.s32 %v860_v33, 5  ;;  %vm1099_vm3 = vcmp.eq.s32.totalorder %v971_v3, %v2528_v12 }
 0x310   :  { %2117 = vmatpush3.bf16.msk.msra.mxu1 %vm1972_vm9, %v3971_v21  ;;  %vm1942_vm7 = vmpackc.low %vm1082_vm12, %vm1081_vm1  ;;  %2096 = vmatprep.subr.msk.bf16.mxu0 %vm1958_vm14, %v3971_v21  ;;  %vm1100_vm5 = vcmp.eq.s32.totalorder %v972_v4, %v2528_v12  ;;  %vm1131_vm13 = vcmp.eq.s32.totalorder %v1003_v10, %v2528_v12  ;;  %vm1132_vm10 = vcmp.eq.s32.totalorder %v1004_v17, %v2528_v12  ;;  %v845_v39 = vadd.s32 240, %v2530_v13 }
 0x311   :  { %2118 = vmatprep.subr.msk.bf16.mxu1 %vm1990_vm11, %v3971_v21  ;;  %vm1974_vm6 = vmpackc.low %vm1114_vm4, %vm1113_vm2  ;;  %vm3162_vm9 = vcmp.eq.s32.totalorder %v955_v34, %v2528_v12  ;;  %vm3167_vm8 = vcmp.eq.s32.totalorder %v956_v38, %v2528_v12  ;;  %vm3172_vm14 = vcmp.eq.s32.totalorder %v987_v40, %v2528_v12  ;;  %vm3177_vm1 = vcmp.eq.s32.totalorder %v988_v14, %v2528_v12 }
 0x312   :  { %vm1960_vm0 = vmpackc.low %vm1100_vm5, %vm1099_vm3  ;;  %v846_v6 = vadd.s32 248, %v2530_v13  ;;  %v877_v9 = vadd.s32 496, %v2530_v13  ;;  %v878_v16 = vadd.s32 504, %v2530_v13  ;;  %v829_v24 = vadd.s32 112, %v2530_v13 }
 0x313   :  { %2097 = vmatpush3.bf16.msk.msra.mxu0 %vm1942_vm7, %v3971_v21  ;;  %vm1992_vm12 = vmpackc.low %vm1132_vm10, %vm1131_vm13  ;;  %v830_v57 = vadd.s32 120, %v2530_v13  ;;  %v861_v63 = vadd.s32 368, %v2530_v13  ;;  %v862_v1 = vadd.s32 376, %v2530_v13  ;;  %v973_v5 = vshra.s32 %v845_v39, 5 }
 0x314   :  { %2119 = vmatpush3.bf16.msk.msra.mxu1 %vm1974_vm6, %v3971_v21  ;;  %2098 = vmatprep.subr.msk.bf16.mxu0 %vm1960_vm0, %v3971_v21  ;;  %vm1944_vm15 = vmpackc.low %vm3167_vm8, %vm3162_vm9  ;;  %v974_v31 = vshra.s32 %v846_v6, 5  ;;  %v1005_v8 = vshra.s32 %v877_v9, 5  ;;  %v1006_v20 = vshra.s32 %v878_v16, 5  ;;  %v957_v7 = vshra.s32 %v829_v24, 5 }
 0x315   :  { %2120 = vmatprep.subr.msk.bf16.mxu1 %vm1992_vm12, %v3971_v21  ;;  %vm1976_vm11 = vmpackc.low %vm3177_vm1, %vm3172_vm14  ;;  %v958_v15 = vshra.s32 %v830_v57, 5  ;;  %v989_v22 = vshra.s32 %v861_v63, 5  ;;  %v990_v61 = vshra.s32 %v862_v1, 5  ;;  %vm1101_vm2 = vcmp.eq.s32.totalorder %v973_v5, %v2528_v12 }
 0x316   :  { %vm1102_vm4 = vcmp.eq.s32.totalorder %v974_v31, %v2528_v12  ;;  %vm1133_vm7 = vcmp.eq.s32.totalorder %v1005_v8, %v2528_v12  ;;  %vm1134_vm6 = vcmp.eq.s32.totalorder %v1006_v20, %v2528_v12  ;;  %vm1085_vm5 = vcmp.eq.s32.totalorder %v957_v7, %v2528_v12 }
 0x317   :  { %2099 = vmatpush3.bf16.msk.msra.mxu0 %vm1944_vm15, %v3971_v21  ;;  %vm1962_vm3 = vmpackc.low %vm1102_vm4, %vm1101_vm2  ;;  %vm1086_vm13 = vcmp.eq.s32.totalorder %v958_v15, %v2528_v12  ;;  %vm3208_vm10 = vcmp.eq.s32.totalorder %v989_v22, %v2528_v12  ;;  %vm3213_vm0 = vcmp.eq.s32.totalorder %v990_v61, %v2528_v12  ;;  %v895_v19 = vadd.s32 640, %v2530_v13 }
 0x318   :  { %2121 = vmatpush3.bf16.msk.msra.mxu1 %vm1976_vm11, %v3971_v21  ;;  %2100 = vmatprep.subr.msk.bf16.mxu0 %vm1962_vm3, %v3971_v21  ;;  %vm1994_vm9 = vmpackc.low %vm1134_vm6, %vm1133_vm7  ;;  %v896_v18 = vadd.s32 648, %v2530_v13  ;;  %v927_v25 = vadd.s32 896, %v2530_v13  ;;  %v928_v26 = vadd.s32 904, %v2530_v13  ;;  %v879_v32 = vadd.s32 512, %v2530_v13 }
 0x319   :  { %2122 = vmatprep.subr.msk.bf16.mxu1 %vm1994_vm9, %v3971_v21  ;;  %vm1946_vm8 = vmpackc.low %vm1086_vm13, %vm1085_vm5  ;;  %v1023_v28 = vshra.s32 %v895_v19, 5  ;;  %v880_v33 = vadd.s32 520, %v2530_v13  ;;  %v911_v3 = vadd.s32 768, %v2530_v13  ;;  %v912_v4 = vadd.s32 776, %v2530_v13 }
 0x31a   :  { %vm1978_vm14 = vmpackc.low %vm3213_vm0, %vm3208_vm10  ;;  %v1024_v36 = vshra.s32 %v896_v18, 5  ;;  %v1055_v60 = vshra.s32 %v927_v25, 5  ;;  %v1056_v30 = vshra.s32 %v928_v26, 5  ;;  %v897_v10 = vadd.s32 656, %v2530_v13 }
 0x31b   :  { %2101 = vmatpush3.bf16.msk.msra.mxu0 %vm1946_vm8, %v3971_v21  ;;  %vm1151_vm1 = vcmp.eq.s32.totalorder %v1023_v28, %v2528_v12  ;;  %v898_v17 = vadd.s32 664, %v2530_v13  ;;  %v929_v34 = vadd.s32 912, %v2530_v13  ;;  %v930_v38 = vadd.s32 920, %v2530_v13 }
 0x31c   :  { %2123 = vmatpush3.bf16.msk.msra.mxu1 %vm1978_vm14, %v3971_v21  ;;  %vm1152_vm12 = vcmp.eq.s32.totalorder %v1024_v36, %v2528_v12  ;;  %vm1183_vm15 = vcmp.eq.s32.totalorder %v1055_v60, %v2528_v12  ;;  %vm1184_vm11 = vcmp.eq.s32.totalorder %v1056_v30, %v2528_v12  ;;  %v881_v40 = vadd.s32 528, %v2530_v13 }
 0x31d   :  { %vm2012_vm2 = vmpackc.low %vm1152_vm12, %vm1151_vm1  ;;  %v882_v14 = vadd.s32 536, %v2530_v13  ;;  %v913_v11 = vadd.s32 784, %v2530_v13  ;;  %v914_v35 = vadd.s32 792, %v2530_v13  ;;  %v1007_v37 = vshra.s32 %v879_v32, 5 }
 0x31e   :  { %2130 = vmatprep.subr.msk.bf16.mxu0 %vm2012_vm2, %v3971_v21  ;;  %vm2044_vm4 = vmpackc.low %vm1184_vm11, %vm1183_vm15  ;;  %v1008_v27 = vshra.s32 %v880_v33, 5  ;;  %v1039_v39 = vshra.s32 %v911_v3, 5  ;;  %v1040_v6 = vshra.s32 %v912_v4, 5  ;;  %v1025_v9 = vshra.s32 %v897_v10, 5 }
 0x31f   :  { %2152 = vmatprep.subr.msk.bf16.mxu1 %vm2044_vm4, %v3971_v21  ;;  %v1026_v16 = vshra.s32 %v898_v17, 5  ;;  %v1057_v24 = vshra.s32 %v929_v34, 5  ;;  %v1058_v57 = vshra.s32 %v930_v38, 5  ;;  %v1009_v63 = vshra.s32 %v881_v40, 5 }
 0x320   :  { %v1010_v1 = vshra.s32 %v882_v14, 5  ;;  %v1041_v5 = vshra.s32 %v913_v11, 5  ;;  %v1042_v31 = vshra.s32 %v914_v35, 5  ;;  %v899_v8 = vadd.s32 672, %v2530_v13 }
 0x321   :  { %v900_v20 = vadd.s32 680, %v2530_v13  ;;  %v931_v7 = vadd.s32 928, %v2530_v13  ;;  %v932_v15 = vadd.s32 936, %v2530_v13  ;;  %v883_v22 = vadd.s32 544, %v2530_v13 }
 0x322   :  { %v884_v61 = vadd.s32 552, %v2530_v13  ;;  %vm3254_vm7 = vcmp.eq.s32.totalorder %v1007_v37, %v2528_v12  ;;  %vm3259_vm6 = vcmp.eq.s32.totalorder %v1008_v27, %v2528_v12  ;;  %v3264_v19 = vadd.s32 800, %v2530_v13 }
 0x323   :  { %v3267_v18 = vadd.s32 808, %v2530_v13  ;;  %v3270_v25 = vadd.s32 688, %v2530_v13  ;;  %v3273_v26 = vadd.s32 696, %v2530_v13  ;;  %vm3276_vm3 = vcmp.eq.s32.totalorder %v1039_v39, %v2528_v12 }
 0x324   :  { %vm3281_vm5 = vcmp.eq.s32.totalorder %v1040_v6, %v2528_v12  ;;  %v3286_v60 = vadd.s32 944, %v2530_v13  ;;  %v3289_v30 = vadd.s32 952, %v2530_v13  ;;  %v3292_v32 = vadd.s32 560, %v2530_v13 }
 0x325   :  { %v3295_v33 = vadd.s32 568, %v2530_v13  ;;  %vm3298_vm13 = vcmp.eq.s32.totalorder %v1025_v9, %v2528_v12  ;;  %vm3303_vm10 = vcmp.eq.s32.totalorder %v1026_v16, %v2528_v12  ;;  %v1027_v10 = vshra.s32 %v899_v8, 5 }
 0x326   :  { %v1028_v17 = vshra.s32 %v900_v20, 5  ;;  %v3308_v34 = vadd.s32 816, %v2530_v13  ;;  %v3311_v38 = vadd.s32 824, %v2530_v13  ;;  %vm3314_vm0 = vcmp.eq.s32.totalorder %v1057_v24, %v2528_v12 }
 0x327   :  { %vm3319_vm9 = vcmp.eq.s32.totalorder %v1058_v57, %v2528_v12  ;;  %v1059_v11 = vshra.s32 %v931_v7, 5  ;;  %v1060_v35 = vshra.s32 %v932_v15, 5  ;;  %v1011_v37 = vshra.s32 %v883_v22, 5 }
 0x328   :  { %v1012_v27 = vshra.s32 %v884_v61, 5  ;;  %vm3324_vm8 = vcmp.eq.s32.totalorder %v1009_v63, %v2528_v12  ;;  %vm3329_vm14 = vcmp.eq.s32.totalorder %v1010_v1, %v2528_v12  ;;  %v1043_v9 = vshra.s32 %v3264_v19, 5 }
 0x329   :  { %v1044_v16 = vshra.s32 %v3267_v18, 5  ;;  %v1029_v24 = vshra.s32 %v3270_v25, 5  ;;  %v1030_v57 = vshra.s32 %v3273_v26, 5  ;;  %vm3338_vm1 = vcmp.eq.s32.totalorder %v1041_v5, %v2528_v12 }
 0x32a   :  { %vm3343_vm12 = vcmp.eq.s32.totalorder %v1042_v31, %v2528_v12  ;;  %v1061_v1 = vshra.s32 %v3286_v60, 5  ;;  %v1062_v20 = vshra.s32 %v3289_v30, 5  ;;  %v1013_v7 = vshra.s32 %v3292_v32, 5 }
 0x32b   :  { %v1014_v15 = vshra.s32 %v3295_v33, 5  ;;  %vm3352_vm15 = vcmp.eq.s32.totalorder %v1027_v10, %v2528_v12  ;;  %v4197_v5 = vmov 0  ;;  %vm3357_vm11 = vcmp.eq.s32.totalorder %v1028_v17, %v2528_v12 }
 0x32c   :  { %v4198_v5 = vsel %vm3352_vm15, 4294967295, %v4197_v5  ;;  %v4199_v31 = vmov 0  ;;  %v1045_v19 = vshra.s32 %v3308_v34, 5  ;;  %v1046_v18 = vshra.s32 %v3311_v38, 5 }
 0x32d   :  { %v4200_v31 = vsel %vm3357_vm11, 4294967295, %v4199_v31  ;;  %v903_v25 = vadd.s32 704, %v2530_v13  ;;  %v904_v26 = vadd.s32 712, %v2530_v13  ;;  %vm3368_vm2 = vcmp.eq.s32.totalorder %v1059_v11, %v2528_v12 }
 0x32e   :  { %v4201_v10 = vmov 0  ;;  %vm3373_vm4 = vcmp.eq.s32.totalorder %v1060_v35, %v2528_v12  ;;  %v4203_v17 = vmov 0  ;;  %v935_v34 = vadd.s32 960, %v2530_v13 }
 0x32f   :  { %v4202_v10 = vsel %vm3368_vm2, 4294967295, %v4201_v10  ;;  %v4204_v17 = vsel %vm3373_vm4, 4294967295, %v4203_v17  ;;  %v936_v38 = vadd.s32 968, %v2530_v13  ;;  %vm3382_vm11 = vcmp.eq.s32.totalorder %v1011_v37, %v2528_v12 }
 0x330   :  { %v4205_v11 = vmov 0  ;;  %vm3387_vm2 = vcmp.eq.s32.totalorder %v1012_v27, %v2528_v12  ;;  %v4207_v35 = vmov 0  ;;  %v3395_v21 = vadd.s32 584, %v2530_v13 }
 0x331   :  { %v4206_v11 = vsel %vm3382_vm11, 4294967295, %v4205_v11  ;;  %v4208_v35 = vsel %vm3387_vm2, 4294967295, %v4207_v35  ;;  %vm3400_vm4 = vcmp.eq.s32.totalorder %v1043_v9, %v2528_v12  ;;  %vm3405_vm11 = vcmp.eq.s32.totalorder %v1044_v16, %v2528_v12 }
 0x332   :  { %v4211_v27 = vmov 0  ;;  %v3410_v29 = vadd.s32 832, %v2530_v13  ;;  %v3413_v23 = vadd.s32 840, %v2530_v13  ;;  %vm3418_vm2 = vcmp.eq.s32.totalorder %v1029_v24, %v2528_v12 }
 0x333   :  { %v4212_v27 = vsel %vm3405_vm11, 4294967295, %v4211_v27  ;;  %v4213_v9 = vmov 0  ;;  %v4215_v16 = vmov 0  ;;  %vm3432_vm15 = vcmp.eq.s32.totalorder %v1061_v1, %v2528_v12 }
 0x334   :  { %v4214_v9 = vsel %vm3418_vm2, 4294967295, %v4213_v9  ;;  %vm3437_vm2 = vcmp.eq.s32.totalorder %v1062_v20, %v2528_v12  ;;  %v1063_v24 = vshra.s32 %v935_v34, 5  ;;  %vm3446_vm11 = vcmp.eq.s32.totalorder %v1013_v7, %v2528_v12 }
 0x335   :  { %v4221_v1 = vmov 0  ;;  %v4223_v20 = vmov 0  ;;  %v4225_v7 = vmov 0  ;;  %v1047_v34 = vshra.s32 %v3410_v29, 5 }
 0x336   :  { %v4222_v1 = vsel %vm3446_vm11, 4294967295, %v4221_v1  ;;  %vm3467_vm11 = vcmp.eq.s32.totalorder %v1046_v18, %v2528_v12  ;;  %v4231_v18 = vmov 0  ;;  %v906_v29 = vadd.s32 728, %v2530_v13 }
 0x337   :  { %v889_v62 = vadd.s32 592, %v2530_v13  ;;  %v890_v2 = vadd.s32 600, %v2530_v13  ;;  %v922_v3 = vadd.s32 856, %v2530_v13  ;;  %v907_v8 = vadd.s32 736, %v2530_v13 }
 0x338   :  { %v908_v63 = vadd.s32 744, %v2530_v13 }
 0x339   :  { %v1017_v39 = vshra.s32 %v889_v62, 5  ;;  %v1018_v6 = vshra.s32 %v890_v2, 5 }
 0x3c1   :  { %v1429_v22 = vpop.f32.mrb[16].mxu0  ;;  %v1472_v61 = vpop.f32.mrb[20].mxu1 }
 0x3c2   :  { %v1567_v60 = vmul.f32 %v1429_v22, %v2605_v41  ;;  %v1569_v30 = vmul.f32 %v1472_v61, %v2607_v42  ;;  %v1431_v32 = vpop.f32.mrb[17].mxu0  ;;  %v1474_v33 = vpop.f32.mrb[21].mxu1 }
 0x3c3   :  { %v1568_v41 = vmul.f32 %v1431_v32, %v2609_v43  ;;  %v1570_v42 = vmul.f32 %v1474_v33, %v2611_v44  ;;  %v1433_v22 = vpop.f32.mrb[18].mxu0  ;;  %v1476_v61 = vpop.f32.mrb[22].mxu1  ;;  %v4209_v33 = vmov 0 }
 0x3c4   :  { %v1575_v43 = vmul.f32 %v1433_v22, %v2613_v45  ;;  %v1577_v44 = vmul.f32 %v1476_v61, %v2615_v46  ;;  %v1435_v32 = vpop.f32.mrb[19].mxu0  ;;  %v1478_v37 = vpop.f32.mrb[23].mxu1  ;;  %v4210_v33 = vsel %vm3400_vm4, 4294967295, %v4209_v33  ;;  %vm3423_vm4 = vcmp.eq.s32.totalorder %v1030_v57, %v2528_v12 }
 0x3c5   :  { %v1576_v45 = vmul.f32 %v1435_v32, %v2617_v47  ;;  %v1578_v46 = vmul.f32 %v1478_v37, %v2619_v48  ;;  %v4216_v16 = vsel %vm3423_vm4, 4294967295, %v4215_v16  ;;  %v1031_v22 = vshra.s32 %v903_v25, 5 }
 0x3c6   :  { %v1032_v61 = vshra.s32 %v904_v26, 5  ;;  %v1583_v59 = vpack.c.bf16 %v1575_v43, %v1567_v60  ;;  %v1585_v58 = vpack.c.bf16 %v1577_v44, %v1569_v30  ;;  %v4217_v47 = vmov 0 }
 0x3c7   :  { %v4218_v47 = vsel %vm3432_vm15, 4294967295, %v4217_v47  ;;  %v4219_v48 = vmov 0  ;;  %v1064_v57 = vshra.s32 %v936_v38, 5  ;;  %v1584_v25 = vpack.c.bf16 %v1576_v45, %v1568_v41 }
 0x3c8   :  { %v4220_v48 = vsel %vm3437_vm2, 4294967295, %v4219_v48  ;;  %v1586_v26 = vpack.c.bf16 %v1578_v46, %v1570_v42  ;;  %vm3451_vm15 = vcmp.eq.s32.totalorder %v1014_v15, %v2528_v12  ;;  %v1015_v60 = vshra.s32 %v3392_v0, 5  ;;  %vm4238_vm2 = vmpackc.low %vm3259_vm6, %vm3254_vm7 }
 0x3c9   :  { %v4224_v20 = vsel %vm3451_vm15, 4294967295, %v4223_v20  ;;  %v1016_v30 = vshra.s32 %v3395_v21, 5  ;;  %vm3462_vm4 = vcmp.eq.s32.totalorder %v1045_v19, %v2528_v12  ;;  %v4227_v15 = vmov 0  ;;  %v1515_v21 = vpop.f32.mrb[20].mxu0  ;;  %1623 = vmatprep.mubr.bf16.mxu0 %v1584_v25  ;;  %vm4244_vm6 = vmpackc.low %vm3303_vm10, %vm3298_vm13 }
 0x3ca   :  { %v4226_v7 = vsel %vm3462_vm4, 4294967295, %v4225_v7  ;;  %v4228_v15 = vsel %vm3467_vm11, 4294967295, %v4227_v15  ;;  %v1048_v0 = vshra.s32 %v3413_v23, 5  ;;  %v1558_v38 = vpop.f32.mrb[24].mxu1  ;;  %1664 = vmatprep.mubr.bf16.mxu1 %v1586_v26  ;;  %vm3478_vm4 = vcmp.eq.s32.totalorder %v1031_v22, %v2528_v12  ;;  %v1517_v43 = vpop.f32.mrb[21].mxu0  ;;  %1624 = vmatmul.mubr.bf16.vlgmr.msra.gmra.mrb[24].mxu0 %v1583_v59 }
 0x3cb   :  { %v4229_v19 = vmov 0  ;;  %vm3483_vm11 = vcmp.eq.s32.totalorder %v1032_v61, %v2528_v12  ;;  %v905_v23 = vadd.s32 720, %v2530_v13  ;;  %v3490_v41 = vmul.f32 %v1515_v21, %v2621_v49  ;;  %v1560_v44 = vpop.f32.mrb[25].mxu1  ;;  %1665 = vmatmul.mubr.bf16.vlgmr.msra.gmra.mrb[28].mxu1 %v1585_v58  ;;  %v1519_v46 = vpop.f32.mrb[22].mxu0 }
 0x3cc   :  { %v4230_v19 = vsel %vm3478_vm4, 4294967295, %v4229_v19  ;;  %v4232_v18 = vsel %vm3483_vm11, 4294967295, %v4231_v18  ;;  %v3493_v42 = vmul.f32 %v1558_v38, %v2623_v50  ;;  %vm3500_vm11 = vcmp.eq.s32.totalorder %v1063_v24, %v2528_v12  ;;  %v1562_v22 = vpop.f32.mrb[26].mxu1  ;;  %v1521_v61 = vpop.f32.mrb[23].mxu0 }
 0x3cd   :  { %v4233_v32 = vmov 0  ;;  %vm3505_vm4 = vcmp.eq.s32.totalorder %v1064_v57, %v2528_v12  ;;  %v4235_v49 = vmov 0  ;;  %v937_v50 = vadd.s32 976, %v2530_v13  ;;  %v1564_v24 = vpop.f32.mrb[27].mxu1 }
 0x3ce   :  { %v4234_v32 = vsel %vm3500_vm11, 4294967295, %v4233_v32  ;;  %v4236_v49 = vsel %vm3505_vm4, 4294967295, %v4235_v49  ;;  %v938_v59 = vadd.s32 984, %v2530_v13  ;;  %v1572_v58 = vmul.f32 %v1517_v43, %v2625_v51  ;;  %vm4239_vm4 = vmpackc.low %vm3281_vm5, %vm3276_vm3 }
 0x3cf   :  { %v1574_v37 = vmul.f32 %v1560_v44, %v2627_v52  ;;  %v4237_v45 = vmov 1.0|1.0   ;;  %vm3530_vm15 = vcmp.eq.s32.totalorder %v1015_v60, %v2528_v12  ;;  %vm3535_vm7 = vcmp.eq.s32.totalorder %v1016_v30, %v2528_v12  ;;  %vm4245_vm3 = vmpackc.low %vm3319_vm9, %vm3314_vm0 }
 0x3d0   :  { %2131 = vmatpush3.bf16.msk.msra.mxu0 %vm4238_vm2, %v4237_v45  ;;  %2153 = vmatpush3.bf16.msk.msra.mxu1 %vm4239_vm4, %v4237_v45  ;;  %v4242_v52 = vmov 0  ;;  %v3542_v28 = vmul.f32 %v1519_v46, %v2629_v53  ;;  %v3545_v36 = vmul.f32 %v1562_v22, %v2631_v54  ;;  %vm4246_vm5 = vnez %v4198_v5 }
 0x3d1   :  { %v4243_v52 = vsel %vm3535_vm7, 4294967295, %v4242_v52  ;;  %2132 = vmatprep.subr.msk.bf16.mxu0 %vm4244_vm6, %v4237_v45  ;;  %2154 = vmatprep.subr.msk.bf16.mxu1 %vm4245_vm3, %v4237_v45  ;;  %vm4247_vm2 = vnez %v4200_v31  ;;  %vm3564_vm11 = vcmp.eq.s32.totalorder %v1047_v34, %v2528_v12  ;;  %v4248_v53 = vmov 0 }
 0x3d2   :  { %v4249_v53 = vsel %vm3564_vm11, 4294967295, %v4248_v53  ;;  %v921_v54 = vadd.s32 848, %v2530_v13  ;;  %v1580_v4 = vmul.f32 %v1521_v61, %v2633_v55  ;;  %v1582_v40 = vmul.f32 %v1564_v24, %v2635_v56 }
 0x3d3   :  { %vm4250_vm13 = vnez %v4202_v10  ;;  %vm4251_vm10 = vnez %v4204_v17  ;;  %v1033_v14 = vshra.s32 %v905_v23, 5  ;;  %v1034_v57 = vshra.s32 %v906_v29, 5 }
 0x3d4   :  { %vm2048_vm0 = vmpackc.low %vm4251_vm10, %vm4250_vm13  ;;  %v1587_v25 = vpack.c.bf16 %v3542_v28, %v3490_v41  ;;  %v1589_v26 = vpack.c.bf16 %v3545_v36, %v3493_v42  ;;  %vm4252_vm9 = vnez %v4206_v11  ;;  %vm4253_vm6 = vnez %v4208_v35 }
 0x3d5   :  { %v1065_v55 = vshra.s32 %v937_v50, 5  ;;  %v1066_v56 = vshra.s32 %v938_v59, 5  ;;  %v1588_v60 = vpack.c.bf16 %v1580_v4, %v1572_v58  ;;  %v1590_v10 = vpack.c.bf16 %v1582_v40, %v1574_v37  ;;  %vm4254_vm13 = vmpackc.low %vm3329_vm14, %vm3324_vm8 }
 0x3d6   :  { %2133 = vmatpush3.bf16.msk.msra.mxu0 %vm4254_vm13, %v4237_v45  ;;  %vm4255_vm10 = vmpackc.low %vm3343_vm12, %vm3338_vm1  ;;  %vm4256_vm3 = vnez %v4210_v33  ;;  %vm4257_vm4 = vnez %v4212_v27  ;;  %vm3601_vm7 = vcmp.eq.s32.totalorder %v1048_v0, %v2528_v12  ;;  %v4258_v17 = vmov 0 }
 0x3d7   :  { %2155 = vmatpush3.bf16.msk.msra.mxu1 %vm4255_vm10, %v4237_v45  ;;  %v4259_v17 = vsel %vm3601_vm7, 4294967295, %v4258_v17  ;;  %vm4260_vm8 = vmpackc.low %vm4247_vm2, %vm4246_vm5  ;;  %vm4261_vm14 = vnez %v4214_v9  ;;  %vm4262_vm1 = vnez %v4216_v16  ;;  %1705 = vmatprep.mubr.bf16.mxu0 %v1588_v60  ;;  %vm4263_vm13 = vnez %v4218_v47 }
 0x3d8   :  { %2134 = vmatprep.subr.msk.bf16.mxu0 %vm4260_vm8, %v4237_v45  ;;  %2156 = vmatprep.subr.msk.bf16.mxu1 %vm2048_vm0, %v4237_v45  ;;  %vm4264_vm5 = vnez %v4220_v48  ;;  %vm3623_vm0 = vcmp.eq.s32.totalorder %v1033_v14, %v2528_v12  ;;  %v4265_v5 = vmov 0  ;;  %vm3628_vm10 = vcmp.eq.s32.totalorder %v1034_v57, %v2528_v12  ;;  %vm4275_vm11 = vmpackc.low %vm4253_vm6, %vm4252_vm9 }
 0x3d9   :  { %1746 = vmatprep.mubr.bf16.mxu1 %v1590_v10  ;;  %v4266_v5 = vsel %vm3623_vm0, 4294967295, %v4265_v5  ;;  %v4267_v31 = vmov 0  ;;  %v1049_v30 = vshra.s32 %v921_v54, 5  ;;  %v1050_v34 = vshra.s32 %v922_v3, 5  ;;  %v4350_v54 = vld [vmem:[#allocation12_spill] sm:$0xff] }
 0x3da   :  { %v4268_v31 = vsel %vm3628_vm10, 4294967295, %v4267_v31  ;;  %vm4269_vm8 = vnez %v4222_v1  ;;  %vm4270_vm12 = vnez %v4224_v20  ;;  %vm3637_vm7 = vcmp.eq.s32.totalorder %v1065_v55, %v2528_v12  ;;  %2135 = vmatpush3.bf16.msk.msra.mxu0 %vm4275_vm11, %v4237_v45  ;;  %vm4279_vm11 = vmpackc.low %vm4262_vm1, %vm4261_vm14 }
 0x3db   :  { %v4271_v0 = vmov 0  ;;  %vm3642_vm2 = vcmp.eq.s32.totalorder %v1066_v56, %v2528_v12  ;;  %v4273_v21 = vmov 0  ;;  %v939_v38 = vadd.s32 992, %v2530_v13  ;;  %2136 = vmatprep.subr.msk.bf16.mxu0 %vm4279_vm11, %v4237_v45 }
 0x3dc   :  { %v4272_v0 = vsel %vm3637_vm7, 4294967295, %v4271_v0  ;;  %v4274_v21 = vsel %vm3642_vm2, 4294967295, %v4273_v21  ;;  %v940_v23 = vadd.s32 1000, %v2530_v13  ;;  %vm4276_vm7 = vmpackc.low %vm4257_vm4, %vm4256_vm3  ;;  %vm4277_vm2 = vnez %v4226_v7  ;;  %v4347_v7 = vld [vmem:[#allocation14_spill] sm:$0xff] }
 0x3dd   :  { %2157 = vmatpush3.bf16.msk.msra.mxu1 %vm4276_vm7, %v4237_v45  ;;  %vm4278_vm10 = vnez %v4228_v15  ;;  %v891_v29 = vadd.s32 608, %v2530_v13  ;;  %v892_v35 = vadd.s32 616, %v2530_v13  ;;  %v923_v11 = vadd.s32 864, %v2530_v13  ;;  %vm4280_vm7 = vmpackc.low %vm4264_vm5, %vm4263_vm13 }
 0x3de   :  { %v924_v43 = vadd.s32 872, %v2530_v13  ;;  %2158 = vmatprep.subr.msk.bf16.mxu1 %vm4280_vm7, %v4237_v45  ;;  %vm4281_vm4 = vnez %v4230_v19  ;;  %vm4282_vm9 = vnez %v4232_v18  ;;  %vm3685_vm3 = vcmp.eq.s32.totalorder %v1017_v39, %v2528_v12  ;;  %vm4294_vm5 = vmpackc.low %vm4270_vm12, %vm4269_vm8 }
 0x3df   :  { %v4283_v33 = vmov 0  ;;  %vm3690_vm14 = vcmp.eq.s32.totalorder %v1018_v6, %v2528_v12  ;;  %v4285_v27 = vmov 0  ;;  %v1035_v9 = vshra.s32 %v907_v8, 5  ;;  %2137 = vmatpush3.bf16.msk.msra.mxu0 %vm4294_vm5, %v4237_v45  ;;  %vm4298_vm12 = vmpackc.low %vm4282_vm9, %vm4281_vm4 }
 0x3e0   :  { %v4284_v33 = vsel %vm3685_vm3, 4294967295, %v4283_v33  ;;  %v4286_v27 = vsel %vm3690_vm14, 4294967295, %v4285_v27  ;;  %v1036_v16 = vshra.s32 %v908_v63, 5  ;;  %vm4287_vm1 = vnez %v4234_v32  ;;  %2138 = vmatprep.subr.msk.bf16.mxu0 %vm4298_vm12, %v4237_v45 }
 0x3e1   :  { %vm4288_vm13 = vnez %v4236_v49  ;;  %vm3699_vm11 = vcmp.eq.s32.totalorder %v1049_v30, %v2528_v12  ;;  %v4289_v47 = vmov 0  ;;  %vm3704_vm7 = vcmp.eq.s32.totalorder %v1050_v34, %v2528_v12 }
 0x3e2   :  { %v4290_v47 = vsel %vm3699_vm11, 4294967295, %v4289_v47  ;;  %v4291_v48 = vmov 0  ;;  %v909_v44 = vadd.s32 752, %v2530_v13  ;;  %v910_v50 = vadd.s32 760, %v2530_v13 }
 0x3e3   :  { %v4292_v48 = vsel %vm3704_vm7, 4294967295, %v4291_v48  ;;  %vm4293_vm6 = vnez %v4243_v52  ;;  %v1067_v59 = vshra.s32 %v939_v38, 5  ;;  %v1068_v58 = vshra.s32 %v940_v23, 5  ;;  %vm4295_vm7 = vmpackc.low %vm4278_vm10, %vm4277_vm2 }
 0x3e4   :  { %v941_v37 = vadd.s32 1008, %v2530_v13  ;;  %v942_v46 = vadd.s32 1016, %v2530_v13  ;;  %2159 = vmatpush3.bf16.msk.msra.mxu1 %vm4295_vm7, %v4237_v45  ;;  %vm4296_vm0 = vnez %v4249_v53  ;;  %vm4297_vm11 = vnez %v4259_v17  ;;  %vm4299_vm2 = vmpackc.low %vm4288_vm13, %vm4287_vm1 }
 0x3e5   :  { %v1019_v22 = vshra.s32 %v891_v29, 5  ;;  %v1020_v62 = vshra.s32 %v892_v35, 5  ;;  %v1051_v2 = vshra.s32 %v923_v11, 5  ;;  %v1052_v20 = vshra.s32 %v924_v43, 5  ;;  %2160 = vmatprep.subr.msk.bf16.mxu1 %vm4299_vm2, %v4237_v45  ;;  %vm4312_vm13 = vmmov %vm3530_vm15 }
 0x3e6   :  { %vm4300_vm10 = vnez %v4266_v5  ;;  %vm4301_vm8 = vnez %v4268_v31  ;;  %vm3749_vm7 = vcmp.eq.s32.totalorder %v1035_v9, %v2528_v12  ;;  %vm3754_vm4 = vcmp.eq.s32.totalorder %v1036_v16, %v2528_v12  ;;  %vm4313_vm15 = vmpackc.low %vm4293_vm6, %vm4312_vm13 }
 0x3e7   :  { %v893_v15 = vadd.s32 624, %v2530_v13  ;;  %v894_v19 = vadd.s32 632, %v2530_v13  ;;  %vm4306_vm9 = vnez %v4272_v0  ;;  %vm4307_vm1 = vnez %v4274_v21  ;;  %2139 = vmatpush3.bf16.msk.msra.mxu0 %vm4313_vm15, %v4237_v45  ;;  %vm4314_vm12 = vmpackc.low %vm4297_vm11, %vm4296_vm0 }
 0x3e8   :  { %v1037_v18 = vshra.s32 %v909_v44, 5  ;;  %v1038_v32 = vshra.s32 %v910_v50, 5  ;;  %v925_v49 = vadd.s32 880, %v2530_v13  ;;  %v926_v61 = vadd.s32 888, %v2530_v13  ;;  %2161 = vmatpush3.bf16.msk.msra.mxu1 %vm4314_vm12, %v4237_v45  ;;  %vm4321_vm15 = vmpackc.low %vm4301_vm8, %vm4300_vm10  ;;  %v2060_v44 = vld [vmem:[#allocation5 + $0x2] ss:$0 sm:$0xff] }
 0x3e9   :  { %vm3771_vm2 = vcmp.eq.s32.totalorder %v1067_v59, %v2528_v12  ;;  %v4308_v24 = vmov 0  ;;  %vm3776_vm5 = vcmp.eq.s32.totalorder %v1068_v58, %v2528_v12  ;;  %v1069_v3 = vshra.s32 %v941_v37, 5  ;;  %2140 = vmatprep.subr.msk.bf16.mxu0 %vm4321_vm15, %v4237_v45  ;;  %vm4322_vm0 = vmpackc.low %vm4307_vm1, %vm4306_vm9  ;;  %v2061_v58 = vld [vmem:[#allocation5 + $0x3] ss:$0 sm:$0xff] }
 0x3ea   :  { %v4309_v24 = vsel %vm3771_vm2, 4294967295, %v4308_v24  ;;  %v1070_v4 = vshra.s32 %v942_v46, 5  ;;  %vm4315_vm3 = vnez %v4290_v47  ;;  %vm4316_vm14 = vnez %v4292_v48  ;;  %2162 = vmatprep.subr.msk.bf16.mxu1 %vm4322_vm0, %v4237_v45  ;;  %vm4328_vm9 = vmmov %vm3776_vm5 }
 0x3eb   :  { %vm3797_vm2 = vcmp.eq.s32.totalorder %v1019_v22, %v2528_v12  ;;  %vm3802_vm6 = vcmp.eq.s32.totalorder %v1020_v62, %v2528_v12  ;;  %vm3823_vm13 = vcmp.eq.s32.totalorder %v1051_v2, %v2528_v12  ;;  %vm3828_vm10 = vcmp.eq.s32.totalorder %v1052_v20, %v2528_v12  ;;  %v4346_v20 = vld [vmem:[#allocation13_spill] sm:$0xff] }
 0x3ec   :  { %v1021_v40 = vshra.s32 %v893_v15, 5  ;;  %v1022_v14 = vshra.s32 %v894_v19, 5  ;;  %vm4327_vm8 = vnez %v4309_v24  ;;  %vm3837_vm12 = vcmp.eq.s32.totalorder %v1037_v18, %v2528_v12  ;;  %vm2008_vm0 = vmpackc.low %vm3802_vm6, %vm3797_vm2 }
 0x3ed   :  { %vm2056_vm1 = vmpackc.low %vm4328_vm9, %vm4327_vm8  ;;  %vm3842_vm15 = vcmp.eq.s32.totalorder %v1038_v32, %v2528_v12  ;;  %v4331_v55 = vmov 0  ;;  %v1053_v56 = vshra.s32 %v925_v49, 5  ;;  %v1054_v60 = vshra.s32 %v926_v61, 5  ;;  %v4349_v32 = vld [vmem:[#allocation11_spill] sm:$0xff] }
 0x3ee   :  { %v4332_v55 = vsel %vm3842_vm15, 4294967295, %v4331_v55  ;;  %vm3851_vm11 = vcmp.eq.s32.totalorder %v1069_v3, %v2528_v12  ;;  %vm3856_vm8 = vcmp.eq.s32.totalorder %v1070_v4, %v2528_v12  ;;  %v4335_v17 = vmov 0  ;;  %vm4340_vm2 = vmpackc.low %vm4316_vm14, %vm4315_vm3 }
 0x3ef   :  { %v4336_v17 = vsel %vm3856_vm8, 4294967295, %v4335_v17  ;;  %vm4337_vm9 = vnez %v4286_v27  ;;  %vm4338_vm5 = vnez %v4284_v33  ;;  %2163 = vmatpush3.bf16.msk.msra.mxu1 %vm4340_vm2, %v4237_v45  ;;  %vm2040_vm6 = vmpackc.low %vm3828_vm10, %vm3823_vm13  ;;  %vm1149_vm14 = vcmp.eq.s32.totalorder %v1021_v40, %v2528_v12 }
 0x3f0   :  { %vm4339_vm15 = vmpackc.low %vm4337_vm9, %vm4338_vm5  ;;  %2164 = vmatprep.subr.msk.bf16.mxu1 %vm2056_vm1, %v4237_v45  ;;  %vm4342_vm5 = vnez %v4332_v55  ;;  %vm4343_vm13 = vnez %v4336_v17  ;;  %vm1181_vm9 = vcmp.eq.s32.totalorder %v1053_v56, %v2528_v12  ;;  %v4344_v39 = vmov 0.0  }
 0x3f1   :  { %2141 = vmatpush3.bf16.msk.msra.mxu0 %vm4339_vm15, %v4237_v45  ;;  %vm4341_vm8 = vmpackc.low %vm3754_vm4, %vm3749_vm7  ;;  %vm1150_vm15 = vcmp.eq.s32.totalorder %v1022_v14, %v2528_v12  ;;  %vm1182_vm7 = vcmp.eq.s32.totalorder %v1054_v60, %v2528_v12  ;;  %v2264_v12 = vld [vmem:[%s3942_s8] sm:$0xff]  }
 0x3f2   :  { %2142 = vmatprep.subr.msk.bf16.mxu0 %vm4341_vm8, %v4237_v45  ;;  %vm2026_vm3 = vmpackc.low %vm4342_vm5, %vm3837_vm12  ;;  %vm4348_vm12 = vcmask 261120  }
 0x3f3   :  { %vm2058_vm10 = vmpackc.low %vm4343_vm13, %vm3851_vm11  ;;  %2165 = vmatpush3.bf16.msk.msra.mxu1 %vm2040_vm6, %v4237_v45  ;;  %vm4345_vm11 = vmmov 0  }
 0x3f4   :  { %vm2010_vm4 = vmpackc.low %vm1150_vm15, %vm1149_vm14  ;;  %2166 = vmatprep.subr.msk.bf16.mxu1 %vm2058_vm10, %v4237_v45 }
 0x3f5   :  { %2143 = vmatpush3.bf16.msk.msra.mxu0 %vm2008_vm0, %v4237_v45  ;;  %vm2042_vm1 = vmpackc.low %vm1182_vm7, %vm1181_vm9 }
 0x3f6   :  { %2144 = vmatprep.subr.msk.bf16.mxu0 %vm2026_vm3, %v4237_v45 }
 0x3f7   :  { %2167 = vmatpush3.bf16.msk.msra.mxu1 %vm2042_vm1, %v4237_v45 }
 0x3f9   :  { %2145 = vmatpush3.bf16.msk.msra.mxu0 %vm2010_vm4, %v4237_v45  ;;  %v2265_v45 = vld [vmem:[%s3942_s8 + $0x8] sm:$0xff]   ;;  %s2346_s8 = smov [#allocation7]  }
 0x3fa   :  { %2229 = vmatprep.subr.bf16.mxu0 %v4344_v39  ;;  %1747 = vmatmul.mubr.bf16.vlgmr.msra.gmra.mrb[32].mxu1 %v1589_v26  ;;  %s1839_s30 = sshll.u32 %s2346_s8, 4  ;;  %s1840_s30 = int_to_ptr.vmem [resolvable:$true] %s1839_s30 }
 0x3fb   :  { %s2310_s1 = scalar_lea.vmem %s1840_s30, 256  ;;  %p2315_p3 = scmp.lt.s32.totalorder %s1840_s30, %s1840_s30 }
 0x3fc   :  { %1706 = vmatmul.mubr.bf16.vlgmr.msra.gmra.mrb[28].mxu0 %v1587_v25  ;;  %p2311_p2 = scmp.ne.s32.totalorder %s1840_s30, %s2310_s1  ;;  %p2316_p4 = scmp.lt.s32.totalorder %s2310_s1, %s2310_s1 }
 0x3fd   :  { %2233 = vmatprep.mubr.msk.bf16.mxu0 %vm4345_vm11, %v4344_v39  ;;  %2230 = vmatpush3.bf16.msra.mxu0 %v2264_v12 }
 0x3fe   :  { %2231 = vmatprep.subr.bf16.mxu0 %v4344_v39  ;;  %p2317_p5 = por %p2316_p4, %p2315_p3 }
 0x400   :  { %p2318_p6 = pnand %p2317_p5, %p2311_p2 }
 0x401   :  { %2232 = vmatpush3.bf16.msra.mxu0 %v2265_v45 }
 0x49d   :  { %v2102_v41 = vpop.f32.mrb[24].mxu0 }
 0x49e   :  { %v2124_v28 = vpop.f32.mrb[28].mxu1  ;;  %v2103_v25 = vpop.f32.mrb[25].mxu0 }
 0x49f   :  { %v2125_v42 = vpop.f32.mrb[29].mxu1  ;;  %v2104_v36 = vadd.f32 %v2103_v25, %v2102_v41  ;;  %v2105_v6 = vpop.f32.mrb[26].mxu0 }
 0x4a0   :  { %v2126_v26 = vadd.f32 %v2125_v42, %v2124_v28  ;;  %v2127_v8 = vpop.f32.mrb[30].mxu1  ;;  %v2106_v63 = vpop.f32.mrb[27].mxu0 }
 0x4a1   :  { %v2128_v5 = vpop.f32.mrb[31].mxu1  ;;  %v2107_v30 = vadd.f32 %v2106_v63, %v2105_v6 }
 0x4a2   :  { %v1667_v31 = vadd.f32 %v2126_v26, %v2104_v36  ;;  %v2129_v34 = vadd.f32 %v2128_v5, %v2127_v8 }
 0x4a4   :  { %v1670_v0 = vadd.f32 %v2129_v34, %v2107_v30 }
 0x4cd   :  { %v2168_v38 = vpop.f32.mrb[32].mxu1 }
 0x4ce   :  { %v2169_v29 = vpop.f32.mrb[33].mxu1 }
 0x4cf   :  { %v2146_v21 = vpop.f32.mrb[28].mxu0  ;;  %v2170_v11 = vadd.f32 %v2169_v29, %v2168_v38  ;;  %v2171_v33 = vpop.f32.mrb[34].mxu1 }
 0x4d0   :  { %v2147_v23 = vpop.f32.mrb[29].mxu0  ;;  %v2172_v9 = vpop.f32.mrb[35].mxu1 }
 0x4d1   :  { %v2148_v35 = vadd.f32 %v2147_v23, %v2146_v21  ;;  %v2149_v43 = vpop.f32.mrb[30].mxu0  ;;  %v2173_v48 = vadd.f32 %v2172_v9, %v2171_v33 }
 0x4d2   :  { %v2150_v27 = vpop.f32.mrb[31].mxu0 }
 0x4d3   :  { %v1708_v16 = vadd.f32 %v2148_v35, %v1667_v31  ;;  %v2151_v47 = vadd.f32 %v2150_v27, %v2149_v43 }
 0x4d5   :  { %v1749_v50 = vadd.f32 %v2170_v11, %v1708_v16  ;;  %v1711_v59 = vadd.f32 %v2151_v47, %v1670_v0 }
 0x4d7   :  { %v1760_v37 = vmul.f32 %v2060_v44, %v1749_v50  ;;  %v1752_v46 = vadd.f32 %v2173_v48, %v1711_v59 }
 0x4d9   :  { %v1767_v22 = vadd.f32 %v2061_v58, %v1760_v37  ;;  %v1761_v62 = vmul.f32 %v2060_v44, %v1752_v46 }
 0x4db   :  { %v1768_v2 = vadd.f32 %v2061_v58, %v1761_v62  ;;  %v1769_v1 = vadd.f32 %v1767_v22, %v4346_v20 }
 0x4dd   :  { %v1770_v15 = vadd.f32 %v1768_v2, %v4347_v7 }
 0x4df   :  { %v1771_v19 = vpack.c.bf16 %v1770_v15, %v1769_v1 }
 0x4e1   :  { %2234 = vmatmul.mubr.msk.bf16.vlgmr.msra.gmra.mrb[32].mxu0 %vm4348_vm12, %v1771_v19 }
 0x5b4   :  { %v1825_v18 = vpop.f32.mrb[32].mxu0 }
 0x5b5   :  { %v1826_v49 = vadd.f32 %v1825_v18, %v4349_v32  ;;  %v2235_v61 = vpop.f32.mrb[33].mxu0 }
 0x5b6   :  { %v1828_v24 = vpop.f32.mrb[34].mxu0 }
 0x5b7   :  { %1832 = vst [vmem:[#allocation7] sm:$0xff] %v1826_v49  ;;  %v1829_v3 = vadd.f32 %v1828_v24, %v4350_v54  ;;  %v2236_v4 = vpop.f32.mrb[35].mxu0 }
 0x5b9   :  { %1833 = vst [vmem:[#allocation7 + $0x8] sm:$0xff] %v1829_v3 }
 0x5ba   :  { %2321 = shalt.err (!%p2318_p6)
}
 0x5bb   :  { %s2322_s2 = scalar_lea.hbm %s3944_s10, 256 }
 0x5bc   :  { %p2323_p7 = scmp.ne.s32.totalorder %s3944_s10, %s2322_s2  ;;  %p2326_p8 = scmp.lt.u32.totalorder %s2322_s2, %s3944_s10 }
 0x5be   :  { %p2328_p9 = pnand %p2326_p8, %p2323_p7 }
 0x5c0   :  { %2331 = shalt.err (!%p2328_p9)
}
 0x5c1   :  { %s2347_s17 = smov 128   ;;  %s2348_s3 = smov 8  }
 0x5c2   :  { %1845 = dma.vmem_to_hbm [thread:$0]  %s1840_s30, 256, %s3944_s10, [#allocation4], %s2347_s17, %s2347_s17, %s2348_s3  }
 0x5c3   :  { %2336 = dma.done.wait [#allocation4], 256  }
 0x5c4   :  { %2337 = vsyncadd [#allocation4], 4294967040 }
 0x5c5   :  { %1849 = vsyncpa [#allocation3], 1 }
 0x5c6   :  { %1850 = vsyncpa [#allocation6], 1 }
 0x5c7   :  { %1851 = vsyncpa [#allocation4], 1 }

</bundles_post_ra>
